<compile_context>
chip_gen: v5e
topology: v5e:2x2
jax: 0.10.0
libtpu: 0.0.40
codegen_flags: <defaults>
</compile_context>

<pallas_src>
import functools

import jax
import jax.numpy as jnp
from jax.experimental import pallas as pl
from jax.experimental.pallas import tpu as pltpu

LN_EPS = 1e-5  # torch.nn.LayerNorm default

# a @ b^T: contract last dim of both operands.
_TRANS_B_DIM_NUMBERS = (((1,), (1,)), ((), ()))

# Keep the per-step working set comfortably under v7x's 64 MiB-per-TensorCore VMEM.
_VMEM_TILE_BUDGET = 48 * 1024 * 1024


def _round_up(n, m):
    return (n + m - 1) // m * m


def _ln_fused(v, gamma, beta):
    """One-pass LayerNorm: E[v], E[v^2] in one sweep; variance clamped >= 0."""
    inv_d = 1.0 / v.shape[-1]
    s1 = jnp.sum(v, axis=-1, keepdims=True)
    s2 = jnp.sum(v * v, axis=-1, keepdims=True)
    mu = s1 * inv_d
    var = jnp.maximum(s2 * inv_d - mu * mu, 0.0)   # clamp f32 cancellation
    return (v - mu) * jax.lax.rsqrt(var + LN_EPS) * gamma + beta


def _row_mask(shape, limit):
    row = jax.lax.broadcasted_iota(jnp.int32, shape, 0)
    return row < limit


def _critic_kernel(
    obs_ref,            # (TB, obs_dim)   batch tile (f32)
    act_ref,            # (TB, act_dim)   batch tile (f32)
    ln0_obs_ref,        # (2, obs_dim)    rows: [gamma_obs, beta_obs]     (resident, f32)
    ln0_act_ref,        # (2, act_dim)    rows: [gamma_act, beta_act]     (resident, f32)
    w1_obs_ref,         # (obs_dim, H)    (resident, bf16 or f32)
    w1_act_ref,         # (act_dim, H)    (resident, bf16 or f32)
    w2_ref,             # (H, H)          (resident, bf16 or f32)
    ph_ref,             # (8, H) rows: b1, ln1_g, ln1_b, b2, ln2_g, ln2_b, wq, bq (resident, f32)
    out_ref,            # (1, TB)         lane-dense q row for this batch tile
    *, batch, tile_b, mask_rows,
):
    obs = obs_ref[...]
    act = act_ref[...]

    if mask_rows:
        # Ragged last tile (grid = cdiv(B, TB), no wrapper-side jnp.pad copy):
        # rows >= B hold unspecified data; zero them so nothing non-finite is
        # produced.  Their q lanes are discarded by the wrapper slice.
        limit = batch - pl.program_id(0) * tile_b
        obs = jnp.where(_row_mask(obs.shape, limit), obs, 0.0)
        act = jnp.where(_row_mask(act.shape, limit), act, 0.0)

    d_in = obs.shape[-1] + act.shape[-1]
    inv_d = 1.0 / d_in

    # ---- feature LayerNorm over concat([obs, act]) without materializing the
    # concat.  Two-pass form: robust on raw (possibly large-magnitude) inputs,
    # no E[x^2] - mu^2 cancellation.
    mu = (jnp.sum(obs, axis=-1, keepdims=True)
          + jnp.sum(act, axis=-1, keepdims=True)) * inv_d
    obs_c = obs - mu
    act_c = act - mu
    var = (jnp.sum(obs_c * obs_c, axis=-1, keepdims=True)
           + jnp.sum(act_c * act_c, axis=-1, keepdims=True)) * inv_d
    inv = jax.lax.rsqrt(var + LN_EPS)

    ln0o = ln0_obs_ref[...]
    ln0a = ln0_act_ref[...]
    obs_n = obs_c * inv * ln0o[0:1, :] + ln0o[1:2, :]
    act_n = act_c * inv * ln0a[0:1, :] + ln0a[1:2, :]

    # ---- unpack small resident params (static sublane slices of one (8, H) slab)
    ph = ph_ref[...]
    b1, g1, be1 = ph[0:1, :], ph[1:2, :], ph[2:3, :]
    b2, g2, be2 = ph[3:4, :], ph[4:5, :], ph[5:6, :]
    wq_row = ph[6:7, :]        # (1, H)
    bq = ph[7:8, 0:1]          # (1, 1)

    mxu = w1_obs_ref.dtype     # bf16 (default) or f32; accumulation is always f32

    # ---- fc1: split matmul (obs part + act part), ReLU, fused LayerNorm
    h = (jnp.dot(obs_n.astype(mxu), w1_obs_ref[...],
                 preferred_element_type=jnp.float32)
         + jnp.dot(act_n.astype(mxu), w1_act_ref[...],
                   preferred_element_type=jnp.float32)
         + b1)
    h = jnp.maximum(h, 0.0)
    h = _ln_fused(h, g1, be1)

    # ---- hidden layer (layer_N = 1): Linear -> ReLU -> LayerNorm
    h = jnp.dot(h.astype(mxu), w2_ref[...], preferred_element_type=jnp.float32) + b2
    h = jnp.maximum(h, 0.0)
    h = _ln_fused(h, g2, be2)

    # ---- q_outs as a lane-dense row: (1, H) x (TB, H)^T -> (1, TB).
    # Kept f32: it is ~1/H of fc2's MXU work and keeps the final value tight.
    q = jax.lax.dot_general(wq_row, h, _TRANS_B_DIM_NUMBERS,
                            preferred_element_type=jnp.float32) + bq
    out_ref[...] = q.astype(out_ref.dtype)


def _vmem_bytes_estimate(tile_b, d_in, hidden, w_bytes):
    act_tiles = 2 * tile_b * d_in * 4                 # double-buffered obs+act tiles
    out_tiles = 2 * tile_b * 4                        # double-buffered (1, TB) blocks
    residents = (2 * d_in * 4                         # LN0 params
                 + d_in * hidden * w_bytes            # w1 (obs + act parts)
                 + hidden * hidden * w_bytes          # w2
                 + 8 * hidden * 4)                    # packed ph slab
    live = tile_b * (2 * d_in + 3 * hidden) * 4       # x_n / h working values (rough)
    return act_tiles + out_tiles + residents + live


def _pick_tile_b(batch, d_in, hidden, w_bytes):
    try:
        kind = jax.devices()[0].device_kind.lower()
    except Exception:  # pragma: no cover - defensive
        kind = ""
    # v5e: 16 MiB scoped-VMEM default, 1 vst slot; a 512-row tile is already
    # ~85% of HBM roofline.  v6e/v7x: 1024 is the sweet spot (~86%).
    cap = 512 if "v5" in kind else 1024
    # >= 2 grid tiles whenever the batch allows it so ("parallel",) can shard
    # the batch across v7x's two TensorCores.  Always a multiple of 128 so the
    # (1, TB) output blocks are lane-dense (unmasked vst).
    tile_b = min(cap, max(128, _round_up((batch + 1) // 2, 128)))
    while tile_b > 128 and _vmem_bytes_estimate(tile_b, d_in, hidden, w_bytes) > _VMEM_TILE_BUDGET:
        tile_b = max(128, _round_up(tile_b // 2, 128))
    return int(tile_b)


def _resident_spec(shape):
    """Constant-index resident operand: one VMEM buffer instead of the default two."""
    try:
        return pl.BlockSpec(shape, lambda i: (0, 0), pipeline_mode=pl.Buffered(1))
    except Exception:  # older jax without pipeline_mode/Buffered: fall back
        return pl.BlockSpec(shape, lambda i: (0, 0))


@functools.partial(jax.jit, static_argnames=("use_bf16_matmul",))
def maddpg_critic_forward(central_obs, central_act, params, use_bf16_matmul=True):
    """Pallas-fused MADDPG critic forward. Returns q_values of shape (B, 1)."""
    obs = central_obs.astype(jnp.float32)
    act = central_act.astype(jnp.float32)
    B, obs_dim = obs.shape
    act_dim = act.shape[1]
    d_in = obs_dim + act_dim
    H = params["w2"].shape[0]

    w_dtype = jnp.bfloat16 if use_bf16_matmul else jnp.float32
    w_bytes = 2 if use_bf16_matmul else 4

    tile_b = _pick_tile_b(B, d_in, H, w_bytes)
    num_tiles = pl.cdiv(B, tile_b)          # ragged last tile; no jnp.pad HBM copy
    b_slab = num_tiles * tile_b             # lane-dense output slab (multiple of 128)

    # ---- pack small parameters (cuts DMA descriptor count; tiny, trace-level ops)
    ln0_g = params["ln0_g"].reshape(-1)
    ln0_b = params["ln0_b"].reshape(-1)
    ln0_obs = jnp.stack([ln0_g[:obs_dim], ln0_b[:obs_dim]])      # (2, obs_dim)
    ln0_act = jnp.stack([ln0_g[obs_dim:], ln0_b[obs_dim:]])      # (2, act_dim)
    w1_obs = params["w1"][:obs_dim].astype(w_dtype)              # (obs_dim, H)
    w1_act = params["w1"][obs_dim:].astype(w_dtype)              # (act_dim, H)
    w2 = params["w2"].astype(w_dtype)                            # (H, H)
    ph = jnp.concatenate(
        [
            params["b1"].reshape(1, H),
            params["ln1_g"].reshape(1, H), params["ln1_b"].reshape(1, H),
            params["b2"].reshape(1, H),
            params["ln2_g"].reshape(1, H), params["ln2_b"].reshape(1, H),
            params["wq"].reshape(1, H),
            jnp.broadcast_to(params["bq"].reshape(1, 1), (1, H)),
        ],
        axis=0,
    )                                                            # (8, H), f32

    batch_spec = lambda d: pl.BlockSpec((tile_b, d), lambda i: (i, 0))

    # Explicit VMEM limit derived from the actual working set (2x slack for
    # compiler scratch), floored at 32 MiB and capped so it still fits v7x.
    est = _vmem_bytes_estimate(tile_b, d_in, H, w_bytes)
    vmem_limit = int(min(64 * 1024 * 1024, max(32 * 1024 * 1024, 2 * est)))

    kernel = functools.partial(
        _critic_kernel, batch=B, tile_b=tile_b, mask_rows=(B % tile_b != 0))

    slab = pl.pallas_call(
        kernel,
        out_shape=jax.ShapeDtypeStruct((1, b_slab), jnp.float32),
        grid=(num_tiles,),
        in_specs=[
            batch_spec(obs_dim),              # obs tile (double-buffered)
            batch_spec(act_dim),              # act tile (double-buffered)
            _resident_spec((2, obs_dim)),     # ln0 (obs part)
            _resident_spec((2, act_dim)),     # ln0 (act part)
            _resident_spec((obs_dim, H)),     # w1_obs
            _resident_spec((act_dim, H)),     # w1_act
            _resident_spec((H, H)),           # w2
            _resident_spec((8, H)),           # packed biases / LN params / wq / bq
        ],
        out_specs=pl.BlockSpec((1, tile_b), lambda i: (0, i)),
        compiler_params=pltpu.CompilerParams(
            dimension_semantics=("parallel",),   # shard batch tiles across TCs (v7x)
            vmem_limit_bytes=vmem_limit,
        ),
    )(obs, act, ln0_obs, ln0_act, w1_obs, w1_act, w2, ph)

    return slab[0, :B].reshape(B, 1)


def init_params(key, input_dim, hidden_size):
    """Deterministic synthetic parameter init (xavier-uniform-like + zero bias)."""
    k1, k2, k3 = jax.random.split(key, 3)

    def xavier(k, fan_in, fan_out):
        limit = jnp.sqrt(6.0 / (fan_in + fan_out))
        return jax.random.uniform(
            k, (fan_in, fan_out), jnp.float32, minval=-limit, maxval=limit
        )

    return {
        # feature LayerNorm
        "ln0_g": jnp.ones((1, input_dim), jnp.float32),
        "ln0_b": jnp.zeros((1, input_dim), jnp.float32),
        # fc1
        "w1": xavier(k1, input_dim, hidden_size),
        "b1": jnp.zeros((1, hidden_size), jnp.float32),
        "ln1_g": jnp.ones((1, hidden_size), jnp.float32),
        "ln1_b": jnp.zeros((1, hidden_size), jnp.float32),
        # hidden layer
        "w2": xavier(k2, hidden_size, hidden_size),
        "b2": jnp.zeros((1, hidden_size), jnp.float32),
        "ln2_g": jnp.ones((1, hidden_size), jnp.float32),
        "ln2_b": jnp.zeros((1, hidden_size), jnp.float32),
        # q_outs
        "wq": xavier(k3, hidden_size, 1),
        "bq": jnp.zeros((1, 1), jnp.float32),
    }


def _layernorm_ref(v, gamma, beta):
    mu = jnp.mean(v, axis=-1, keepdims=True)
    var = jnp.mean((v - mu) * (v - mu), axis=-1, keepdims=True)
    return (v - mu) * jax.lax.rsqrt(var + LN_EPS) * gamma + beta


def _reference_forward(central_obs, central_act, params, matmul_dtype=jnp.float32):
    """Pure-JAX reference matching PyTorch semantics (optionally bf16 matmul operands)."""
    x = jnp.concatenate([central_obs, central_act], axis=1).astype(jnp.float32)
    x = _layernorm_ref(x, params["ln0_g"], params["ln0_b"])
    h = jnp.dot(x.astype(matmul_dtype), params["w1"].astype(matmul_dtype),
                preferred_element_type=jnp.float32) + params["b1"]
    h = jnp.maximum(h, 0.0)
    h = _layernorm_ref(h, params["ln1_g"], params["ln1_b"])
    h = jnp.dot(h.astype(matmul_dtype), params["w2"].astype(matmul_dtype),
                preferred_element_type=jnp.float32) + params["b2"]
    h = jnp.maximum(h, 0.0)
    h = _layernorm_ref(h, params["ln2_g"], params["ln2_b"])
    return h @ params["wq"] + params["bq"]


if __name__ == "__main__":
    # Small shapes consistent with the module's forward.
    batch = 8
    share_obs_dim = 24
    share_act_dim = 8
    hidden_size = 32          # args.hidden_size2
    input_dim = share_obs_dim + share_act_dim

    key = jax.random.PRNGKey(0)
    k_obs, k_act, k_par, k_obs2, k_act2 = jax.random.split(key, 5)
    central_obs = jax.random.normal(k_obs, (batch, share_obs_dim), jnp.float32)
    central_act = jax.random.normal(k_act, (batch, share_act_dim), jnp.float32)
    params = init_params(k_par, input_dim, hidden_size)

    # f32 MXU path vs pure-f32 reference (tight tolerance).
    q32 = jax.block_until_ready(
        maddpg_critic_forward(central_obs, central_act, params, use_bf16_matmul=False))
    q_ref32 = _reference_forward(central_obs, central_act, params)
    assert q32.shape == (batch, 1)
    assert jnp.allclose(q32, q_ref32, atol=1e-4, rtol=1e-4), "f32 kernel mismatch vs reference"

    # Default bf16-MXU path vs a reference that uses the same bf16 matmul operands.
    qbf = jax.block_until_ready(maddpg_critic_forward(central_obs, central_act, params))
    q_refbf = _reference_forward(central_obs, central_act, params, matmul_dtype=jnp.bfloat16)
    assert qbf.shape == (batch, 1)
    assert bool(jnp.all(jnp.isfinite(qbf)))
    assert jnp.allclose(qbf, q_refbf, atol=2e-2, rtol=2e-2), "bf16 kernel mismatch vs reference"

    # Ragged batch (not a multiple of 8/128): exercises the partial-last-tile path.
    batch2 = 10
    obs2 = jax.random.normal(k_obs2, (batch2, share_obs_dim), jnp.float32)
    act2 = jax.random.normal(k_act2, (batch2, share_act_dim), jnp.float32)
    q2 = jax.block_until_ready(
        maddpg_critic_forward(obs2, act2, params, use_bf16_matmul=False))
    q2_ref = _reference_forward(obs2, act2, params)
    assert q2.shape == (batch2, 1)
    assert jnp.allclose(q2, q2_ref, atol=1e-4, rtol=1e-4), "Pallas kernel mismatch (ragged batch)"

    print("KERNEL_OK")
</pallas_src>

<mosaic_0001>
module attributes {stable_mosaic.version = 11 : i64} {
  func.func @_critic_kernel(%arg0: i32, %arg1: memref<128x24xf32, #tpu.memory_space<vmem>>, %arg2: memref<128x8xf32, #tpu.memory_space<vmem>>, %arg3: memref<2x24xf32, #tpu.memory_space<vmem>>, %arg4: memref<2x8xf32, #tpu.memory_space<vmem>>, %arg5: memref<24x32xf32, #tpu.memory_space<vmem>>, %arg6: memref<8x32xf32, #tpu.memory_space<vmem>>, %arg7: memref<32x32xf32, #tpu.memory_space<vmem>>, %arg8: memref<8x32xf32, #tpu.memory_space<vmem>>, %arg9: memref<1x128xf32, #tpu.memory_space<vmem>>) attributes {dimension_semantics = [#tpu.dimension_semantics<parallel>], iteration_bounds = array<i64: 1>, scalar_prefetch = 0 : i64, scratch_operands = 0 : i64, tpu.core_type = #tpu.core_type<tc>, window_params = [{transform_indices = @transform_0, window_bounds = array<i64: 128, 24>}, {transform_indices = @transform_1, window_bounds = array<i64: 128, 8>}, {pipeline_mode = #tpu.pipeline_mode<synchronous>, transform_indices = @transform_2, window_bounds = array<i64: 2, 24>}, {pipeline_mode = #tpu.pipeline_mode<synchronous>, transform_indices = @transform_3, window_bounds = array<i64: 2, 8>}, {pipeline_mode = #tpu.pipeline_mode<synchronous>, transform_indices = @transform_4, window_bounds = array<i64: 24, 32>}, {pipeline_mode = #tpu.pipeline_mode<synchronous>, transform_indices = @transform_5, window_bounds = array<i64: 8, 32>}, {pipeline_mode = #tpu.pipeline_mode<synchronous>, transform_indices = @transform_6, window_bounds = array<i64: 32, 32>}, {pipeline_mode = #tpu.pipeline_mode<synchronous>, transform_indices = @transform_7, window_bounds = array<i64: 8, 32>}, {transform_indices = @transform_8, window_bounds = array<i64: 1, 128>}]} {
    %c0 = arith.constant 0 : index
    %c0_0 = arith.constant 0 : index
    %0 = vector.load %arg1[%c0, %c0_0] : memref<128x24xf32, #tpu.memory_space<vmem>>, vector<128x24xf32>
    %c0_1 = arith.constant 0 : index
    %c0_2 = arith.constant 0 : index
    %1 = vector.load %arg2[%c0_1, %c0_2] : memref<128x8xf32, #tpu.memory_space<vmem>>, vector<128x8xf32>
    %c128_i32 = arith.constant 128 : i32
    %2 = arith.muli %arg0, %c128_i32 : i32
    %c8_i32 = arith.constant 8 : i32
    %3 = arith.subi %c8_i32, %2 : i32
    %4 = tpu.iota {dimensions = array<i32: 0>} : vector<128x24xi32>
    %5 = vector.broadcast %3 : i32 to vector<128x24xi32>
    %6 = arith.cmpi slt, %4, %5 : vector<128x24xi32>
    %cst = arith.constant 0.000000e+00 : f32
    %7 = vector.broadcast %cst : f32 to vector<128x24xf32>
    %8 = arith.select %6, %0, %7 : vector<128x24xi1>, vector<128x24xf32>
    %9 = tpu.iota {dimensions = array<i32: 0>} : vector<128x8xi32>
    %10 = vector.broadcast %3 : i32 to vector<128x8xi32>
    %11 = arith.cmpi slt, %9, %10 : vector<128x8xi32>
    %cst_3 = arith.constant 0.000000e+00 : f32
    %12 = vector.broadcast %cst_3 : f32 to vector<128x8xf32>
    %13 = arith.select %11, %1, %12 : vector<128x8xi1>, vector<128x8xf32>
    %cst_4 = arith.constant dense<0.000000e+00> : vector<128xf32>
    %14 = vector.multi_reduction <add>, %8, %cst_4 [1] : vector<128x24xf32> to vector<128xf32>
    %15 = vector.shape_cast %14 : vector<128xf32> to vector<128x1xf32>
    %cst_5 = arith.constant dense<0.000000e+00> : vector<128xf32>
    %16 = vector.multi_reduction <add>, %13, %cst_5 [1] : vector<128x8xf32> to vector<128xf32>
    %17 = vector.shape_cast %16 : vector<128xf32> to vector<128x1xf32>
    %18 = arith.addf %15, %17 : vector<128x1xf32>
    %cst_6 = arith.constant 3.125000e-02 : f32
    %19 = vector.broadcast %cst_6 : f32 to vector<128x1xf32>
    %20 = arith.mulf %18, %19 : vector<128x1xf32>
    %21 = vector.broadcast %20 : vector<128x1xf32> to vector<128x24xf32>
    %22 = arith.subf %8, %21 : vector<128x24xf32>
    %23 = vector.broadcast %20 : vector<128x1xf32> to vector<128x8xf32>
    %24 = arith.subf %13, %23 : vector<128x8xf32>
    %25 = arith.mulf %22, %22 : vector<128x24xf32>
    %cst_7 = arith.constant dense<0.000000e+00> : vector<128xf32>
    %26 = vector.multi_reduction <add>, %25, %cst_7 [1] : vector<128x24xf32> to vector<128xf32>
    %27 = vector.shape_cast %26 : vector<128xf32> to vector<128x1xf32>
    %28 = arith.mulf %24, %24 : vector<128x8xf32>
    %cst_8 = arith.constant dense<0.000000e+00> : vector<128xf32>
    %29 = vector.multi_reduction <add>, %28, %cst_8 [1] : vector<128x8xf32> to vector<128xf32>
    %30 = vector.shape_cast %29 : vector<128xf32> to vector<128x1xf32>
    %31 = arith.addf %27, %30 : vector<128x1xf32>
    %cst_9 = arith.constant 3.125000e-02 : f32
    %32 = vector.broadcast %cst_9 : f32 to vector<128x1xf32>
    %33 = arith.mulf %31, %32 : vector<128x1xf32>
    %cst_10 = arith.constant 9.99999974E-6 : f32
    %34 = vector.broadcast %cst_10 : f32 to vector<128x1xf32>
    %35 = arith.addf %33, %34 : vector<128x1xf32>
    %36 = math.rsqrt %35 : vector<128x1xf32>
    %c0_11 = arith.constant 0 : index
    %c0_12 = arith.constant 0 : index
    %37 = vector.load %arg3[%c0_11, %c0_12] : memref<2x24xf32, #tpu.memory_space<vmem>>, vector<2x24xf32>
    %c0_13 = arith.constant 0 : index
    %c0_14 = arith.constant 0 : index
    %38 = vector.load %arg4[%c0_13, %c0_14] : memref<2x8xf32, #tpu.memory_space<vmem>>, vector<2x8xf32>
    %39 = vector.broadcast %36 : vector<128x1xf32> to vector<128x24xf32>
    %40 = arith.mulf %22, %39 : vector<128x24xf32>
    %41 = vector.extract_strided_slice %37 {offsets = [0, 0], sizes = [1, 24], strides = [1, 1]} : vector<2x24xf32> to vector<1x24xf32>
    %42 = vector.broadcast %41 : vector<1x24xf32> to vector<128x24xf32>
    %43 = arith.mulf %40, %42 : vector<128x24xf32>
    %44 = vector.extract_strided_slice %37 {offsets = [1, 0], sizes = [1, 24], strides = [1, 1]} : vector<2x24xf32> to vector<1x24xf32>
    %45 = vector.broadcast %44 : vector<1x24xf32> to vector<128x24xf32>
    %46 = arith.addf %43, %45 : vector<128x24xf32>
    %47 = vector.broadcast %36 : vector<128x1xf32> to vector<128x8xf32>
    %48 = arith.mulf %24, %47 : vector<128x8xf32>
    %49 = vector.extract_strided_slice %38 {offsets = [0, 0], sizes = [1, 8], strides = [1, 1]} : vector<2x8xf32> to vector<1x8xf32>
    %50 = vector.broadcast %49 : vector<1x8xf32> to vector<128x8xf32>
    %51 = arith.mulf %48, %50 : vector<128x8xf32>
    %52 = vector.extract_strided_slice %38 {offsets = [1, 0], sizes = [1, 8], strides = [1, 1]} : vector<2x8xf32> to vector<1x8xf32>
    %53 = vector.broadcast %52 : vector<1x8xf32> to vector<128x8xf32>
    %54 = arith.addf %51, %53 : vector<128x8xf32>
    %c0_15 = arith.constant 0 : index
    %c0_16 = arith.constant 0 : index
    %55 = vector.load %arg8[%c0_15, %c0_16] : memref<8x32xf32, #tpu.memory_space<vmem>>, vector<8x32xf32>
    %56 = vector.extract_strided_slice %55 {offsets = [0, 0], sizes = [1, 32], strides = [1, 1]} : vector<8x32xf32> to vector<1x32xf32>
    %57 = vector.extract_strided_slice %55 {offsets = [1, 0], sizes = [1, 32], strides = [1, 1]} : vector<8x32xf32> to vector<1x32xf32>
    %58 = vector.extract_strided_slice %55 {offsets = [2, 0], sizes = [1, 32], strides = [1, 1]} : vector<8x32xf32> to vector<1x32xf32>
    %59 = vector.extract_strided_slice %55 {offsets = [3, 0], sizes = [1, 32], strides = [1, 1]} : vector<8x32xf32> to vector<1x32xf32>
    %60 = vector.extract_strided_slice %55 {offsets = [4, 0], sizes = [1, 32], strides = [1, 1]} : vector<8x32xf32> to vector<1x32xf32>
    %61 = vector.extract_strided_slice %55 {offsets = [5, 0], sizes = [1, 32], strides = [1, 1]} : vector<8x32xf32> to vector<1x32xf32>
    %62 = vector.extract_strided_slice %55 {offsets = [6, 0], sizes = [1, 32], strides = [1, 1]} : vector<8x32xf32> to vector<1x32xf32>
    %63 = vector.extract_strided_slice %55 {offsets = [7, 0], sizes = [1, 1], strides = [1, 1]} : vector<8x32xf32> to vector<1x1xf32>
    %c0_17 = arith.constant 0 : index
    %c0_18 = arith.constant 0 : index
    %64 = vector.load %arg5[%c0_17, %c0_18] : memref<24x32xf32, #tpu.memory_space<vmem>>, vector<24x32xf32>
    %cst_19 = arith.constant dense<0.000000e+00> : vector<128x32xf32>
    %65 = tpu.matmul %46, %64, %cst_19 {dimension_numbers = #tpu.dot_dimension_numbers<[1], [0], [0], [1], [0, 0, 1, 1], [], []>} : vector<128x24xf32>, vector<24x32xf32>, vector<128x32xf32> -> vector<128x32xf32>
    %c0_20 = arith.constant 0 : index
    %c0_21 = arith.constant 0 : index
    %66 = vector.load %arg6[%c0_20, %c0_21] : memref<8x32xf32, #tpu.memory_space<vmem>>, vector<8x32xf32>
    %cst_22 = arith.constant dense<0.000000e+00> : vector<128x32xf32>
    %67 = tpu.matmul %54, %66, %cst_22 {dimension_numbers = #tpu.dot_dimension_numbers<[1], [0], [0], [1], [0, 0, 1, 1], [], []>} : vector<128x8xf32>, vector<8x32xf32>, vector<128x32xf32> -> vector<128x32xf32>
    %68 = arith.addf %65, %67 : vector<128x32xf32>
    %69 = vector.broadcast %56 : vector<1x32xf32> to vector<128x32xf32>
    %70 = arith.addf %68, %69 : vector<128x32xf32>
    %cst_23 = arith.constant 0.000000e+00 : f32
    %71 = vector.broadcast %cst_23 : f32 to vector<128x32xf32>
    %72 = arith.maximumf %70, %71 : vector<128x32xf32>
    %cst_24 = arith.constant dense<0.000000e+00> : vector<128xf32>
    %73 = vector.multi_reduction <add>, %72, %cst_24 [1] : vector<128x32xf32> to vector<128xf32>
    %74 = vector.shape_cast %73 : vector<128xf32> to vector<128x1xf32>
    %75 = arith.mulf %72, %72 : vector<128x32xf32>
    %cst_25 = arith.constant dense<0.000000e+00> : vector<128xf32>
    %76 = vector.multi_reduction <add>, %75, %cst_25 [1] : vector<128x32xf32> to vector<128xf32>
    %77 = vector.shape_cast %76 : vector<128xf32> to vector<128x1xf32>
    %cst_26 = arith.constant 3.125000e-02 : f32
    %78 = vector.broadcast %cst_26 : f32 to vector<128x1xf32>
    %79 = arith.mulf %74, %78 : vector<128x1xf32>
    %cst_27 = arith.constant 3.125000e-02 : f32
    %80 = vector.broadcast %cst_27 : f32 to vector<128x1xf32>
    %81 = arith.mulf %77, %80 : vector<128x1xf32>
    %82 = arith.mulf %79, %79 : vector<128x1xf32>
    %83 = arith.subf %81, %82 : vector<128x1xf32>
    %cst_28 = arith.constant 0.000000e+00 : f32
    %84 = vector.broadcast %cst_28 : f32 to vector<128x1xf32>
    %85 = arith.maximumf %83, %84 : vector<128x1xf32>
    %86 = vector.broadcast %79 : vector<128x1xf32> to vector<128x32xf32>
    %87 = arith.subf %72, %86 : vector<128x32xf32>
    %cst_29 = arith.constant 9.99999974E-6 : f32
    %88 = vector.broadcast %cst_29 : f32 to vector<128x1xf32>
    %89 = arith.addf %85, %88 : vector<128x1xf32>
    %90 = math.rsqrt %89 : vector<128x1xf32>
    %91 = vector.broadcast %90 : vector<128x1xf32> to vector<128x32xf32>
    %92 = arith.mulf %87, %91 : vector<128x32xf32>
    %93 = vector.broadcast %57 : vector<1x32xf32> to vector<128x32xf32>
    %94 = arith.mulf %92, %93 : vector<128x32xf32>
    %95 = vector.broadcast %58 : vector<1x32xf32> to vector<128x32xf32>
    %96 = arith.addf %94, %95 : vector<128x32xf32>
    %c0_30 = arith.constant 0 : index
    %c0_31 = arith.constant 0 : index
    %97 = vector.load %arg7[%c0_30, %c0_31] : memref<32x32xf32, #tpu.memory_space<vmem>>, vector<32x32xf32>
    %cst_32 = arith.constant dense<0.000000e+00> : vector<128x32xf32>
    %98 = tpu.matmul %96, %97, %cst_32 {dimension_numbers = #tpu.dot_dimension_numbers<[1], [0], [0], [1], [0, 0, 1, 1], [], []>} : vector<128x32xf32>, vector<32x32xf32>, vector<128x32xf32> -> vector<128x32xf32>
    %99 = vector.broadcast %59 : vector<1x32xf32> to vector<128x32xf32>
    %100 = arith.addf %98, %99 : vector<128x32xf32>
    %cst_33 = arith.constant 0.000000e+00 : f32
    %101 = vector.broadcast %cst_33 : f32 to vector<128x32xf32>
    %102 = arith.maximumf %100, %101 : vector<128x32xf32>
    %cst_34 = arith.constant dense<0.000000e+00> : vector<128xf32>
    %103 = vector.multi_reduction <add>, %102, %cst_34 [1] : vector<128x32xf32> to vector<128xf32>
    %104 = vector.shape_cast %103 : vector<128xf32> to vector<128x1xf32>
    %105 = arith.mulf %102, %102 : vector<128x32xf32>
    %cst_35 = arith.constant dense<0.000000e+00> : vector<128xf32>
    %106 = vector.multi_reduction <add>, %105, %cst_35 [1] : vector<128x32xf32> to vector<128xf32>
    %107 = vector.shape_cast %106 : vector<128xf32> to vector<128x1xf32>
    %cst_36 = arith.constant 3.125000e-02 : f32
    %108 = vector.broadcast %cst_36 : f32 to vector<128x1xf32>
    %109 = arith.mulf %104, %108 : vector<128x1xf32>
    %cst_37 = arith.constant 3.125000e-02 : f32
    %110 = vector.broadcast %cst_37 : f32 to vector<128x1xf32>
    %111 = arith.mulf %107, %110 : vector<128x1xf32>
    %112 = arith.mulf %109, %109 : vector<128x1xf32>
    %113 = arith.subf %111, %112 : vector<128x1xf32>
    %cst_38 = arith.constant 0.000000e+00 : f32
    %114 = vector.broadcast %cst_38 : f32 to vector<128x1xf32>
    %115 = arith.maximumf %113, %114 : vector<128x1xf32>
    %116 = vector.broadcast %109 : vector<128x1xf32> to vector<128x32xf32>
    %117 = arith.subf %102, %116 : vector<128x32xf32>
    %cst_39 = arith.constant 9.99999974E-6 : f32
    %118 = vector.broadcast %cst_39 : f32 to vector<128x1xf32>
    %119 = arith.addf %115, %118 : vector<128x1xf32>
    %120 = math.rsqrt %119 : vector<128x1xf32>
    %121 = vector.broadcast %120 : vector<128x1xf32> to vector<128x32xf32>
    %122 = arith.mulf %117, %121 : vector<128x32xf32>
    %123 = vector.broadcast %60 : vector<1x32xf32> to vector<128x32xf32>
    %124 = arith.mulf %122, %123 : vector<128x32xf32>
    %125 = vector.broadcast %61 : vector<1x32xf32> to vector<128x32xf32>
    %126 = arith.addf %124, %125 : vector<128x32xf32>
    %cst_40 = arith.constant dense<0.000000e+00> : vector<1x128xf32>
    %127 = tpu.matmul %62, %126, %cst_40 {dimension_numbers = #tpu.dot_dimension_numbers<[1], [1], [0], [0], [0, 0, 1, 0], [], []>} : vector<1x32xf32>, vector<128x32xf32>, vector<1x128xf32> -> vector<1x128xf32>
    %128 = vector.broadcast %63 : vector<1x1xf32> to vector<1x128xf32>
    %129 = arith.addf %127, %128 : vector<1x128xf32>
    %c0_41 = arith.constant 0 : index
    %c0_42 = arith.constant 0 : index
    %130 = vector.load %arg9[%c0_41, %c0_42] : memref<1x128xf32, #tpu.memory_space<vmem>>, vector<1x128xf32>
    tpu.vector_store %arg9[%c0_41, %c0_42], %129 {strides = array<i32>} : memref<1x128xf32, #tpu.memory_space<vmem>>, vector<1x128xf32>,
    return
  }
  func.func @transform_0(%arg0: i32) -> (i32, i32) {
    %c0_i32 = arith.constant 0 : i32
    %c0_i32_0 = arith.constant 0 : i32
    return %arg0, %c0_i32 : i32, i32
  }
  func.func @transform_1(%arg0: i32) -> (i32, i32) {
    %c0_i32 = arith.constant 0 : i32
    %c0_i32_0 = arith.constant 0 : i32
    return %arg0, %c0_i32 : i32, i32
  }
  func.func @transform_2(%arg0: i32) -> (i32, i32) {
    %c0_i32 = arith.constant 0 : i32
    %c0_i32_0 = arith.constant 0 : i32
    %c0_i32_1 = arith.constant 0 : i32
    return %c0_i32, %c0_i32_0 : i32, i32
  }
  func.func @transform_3(%arg0: i32) -> (i32, i32) {
    %c0_i32 = arith.constant 0 : i32
    %c0_i32_0 = arith.constant 0 : i32
    %c0_i32_1 = arith.constant 0 : i32
    return %c0_i32, %c0_i32_0 : i32, i32
  }
  func.func @transform_4(%arg0: i32) -> (i32, i32) {
    %c0_i32 = arith.constant 0 : i32
    %c0_i32_0 = arith.constant 0 : i32
    %c0_i32_1 = arith.constant 0 : i32
    return %c0_i32, %c0_i32_0 : i32, i32
  }
  func.func @transform_5(%arg0: i32) -> (i32, i32) {
    %c0_i32 = arith.constant 0 : i32
    %c0_i32_0 = arith.constant 0 : i32
    %c0_i32_1 = arith.constant 0 : i32
    return %c0_i32, %c0_i32_0 : i32, i32
  }
  func.func @transform_6(%arg0: i32) -> (i32, i32) {
    %c0_i32 = arith.constant 0 : i32
    %c0_i32_0 = arith.constant 0 : i32
    %c0_i32_1 = arith.constant 0 : i32
    return %c0_i32, %c0_i32_0 : i32, i32
  }
  func.func @transform_7(%arg0: i32) -> (i32, i32) {
    %c0_i32 = arith.constant 0 : i32
    %c0_i32_0 = arith.constant 0 : i32
    %c0_i32_1 = arith.constant 0 : i32
    return %c0_i32, %c0_i32_0 : i32, i32
  }
  func.func @transform_8(%arg0: i32) -> (i32, i32) {
    %c0_i32 = arith.constant 0 : i32
    %c0_i32_0 = arith.constant 0 : i32
    return %c0_i32, %arg0 : i32, i32
  }
}

</mosaic_0001>

<bundles_post_ra>
// kernel: maddpg_critic_forward.1
= control target key start
LH: loop header
LB: loop body
LE: loop exit
PB: predicated region body
PF: predicated region fallthrough
CT: control target
= control target key end

     0   :  { %vm129_vm0 = vcmask 195584   ;;  %v2244_v0 = vmov 0.0   ;;  %vm178_vm1 = vcmask 64512   ;;  %s3497_s0 = inlined_call_operand.vmem [shape: f32[8,24], index: 0, kind: input, shape index: {}]   ;;  %s3498_s1 = inlined_call_operand.vmem [shape: f32[8,8], index: 1, kind: input, shape index: {}]   ;;  %s3499_s4 = inlined_call_operand.vmem [shape: f32[24,32], index: 4, kind: input, shape index: {}]   ;;  %s3500_s5 = inlined_call_operand.vmem [shape: f32[8,32], index: 5, kind: input, shape index: {}]   ;;  %s3501_s3 = inlined_call_operand.vmem [shape: f32[2,8], index: 3, kind: input, shape index: {}]   ;;  %s3502_s2 = inlined_call_operand.vmem [shape: f32[2,24], index: 2, kind: input, shape index: {}]   ;;  %s3503_s7 = inlined_call_operand.vmem [shape: f32[8,32], index: 7, kind: input, shape index: {}]   ;;  %s3504_s6 = inlined_call_operand.vmem [shape: f32[32,32], index: 6, kind: input, shape index: {}]   ;;  %s3505_s8 = inlined_call_operand.vmem [shape: f32[1,128], index: 8, kind: output, shape index: {}]  }
   0x1   :  { %137 = vadd.xlane.f32.xlu2 %v2244_v0  ;;  %134 = vadd.xlane.f32.xlu1 %v2244_v0  ;;  %v29_v1 = vld [vmem:[%s3497_s0] sm:$0xff] }
   0x2   :  { %v130_v2 = vsel %vm129_vm0, %v29_v1, 0.0  ;;  %v45_v3 = vld [vmem:[%s3498_s1] sm:$0xff] }
   0x3   :  { %131 = vadd.xlane.f32.xlu0 %v130_v2  ;;  %v179_v4 = vsel %vm178_vm1, %v45_v3, 0.0 }
   0x9   :  { %186 = vadd.xlane.f32.xlu2 %v2244_v0  ;;  %183 = vadd.xlane.f32.xlu1 %v2244_v0 }
   0xb   :  { %180 = vadd.xlane.f32.xlu0 %v179_v4 }
  0x11   :  { %189 = vadd.xlane.f32.xlu1 %v2244_v0  ;;  %143 = vadd.xlane.f32.xlu2 %v2244_v0 }
  0x13   :  { %140 = vadd.xlane.f32.xlu0 %v2244_v0 }
  0x19   :  { %195 = vadd.xlane.f32.xlu2 %v2244_v0  ;;  %146 = vadd.xlane.f32.xlu1 %v2244_v0 }
  0x1b   :  { %192 = vadd.xlane.f32.xlu0 %v2244_v0 }
  0x21   :  { %198 = vadd.xlane.f32.xlu1 %v2244_v0  ;;  %201 = vadd.xlane.f32.xlu2 %v2244_v0 }
  0x23   :  { %149 = vadd.xlane.f32.xlu0 %v2244_v0 }
  0x29   :  { %152 = vadd.xlane.f32.xlu1 %v2244_v0  ;;  %155 = vadd.xlane.f32.xlu2 %v2244_v0 }
  0x2b   :  { %204 = vadd.xlane.f32.xlu0 %v2244_v0 }
  0x31   :  { %207 = vadd.xlane.f32.xlu1 %v2244_v0 }
  0x33   :  { %158 = vadd.xlane.f32.xlu0 %v2244_v0 }
  0x74   :  { %v138_v5 = vpop.xlane.xlu2 %137  ;;  %v135_v6 = vpop.xlane.xlu1 %134 }
  0x76   :  { %v132_v7 = vpop.xlane.xlu0 %131 }
  0x7c   :  { %v187_v8 = vpop.xlane.xlu2 %186  ;;  %v184_v9 = vpop.xlane.xlu1 %183 }
  0x7d   :  { %v229_v10 = vadd.f32 %v187_v8, %v138_v5  ;;  %v228_v11 = vadd.f32 %v184_v9, %v135_v6 }
  0x7e   :  { %v181_v12 = vpop.xlane.xlu0 %180 }
  0x7f   :  { %v245_v13 = vmul.f32 0.03125, %v229_v10  ;;  %v244_v14 = vmul.f32 0.03125, %v228_v11  ;;  %v227_v15 = vadd.f32 %v181_v12, %v132_v7 }
  0x81   :  { %v2317_v16 = vsub.f32 0.0, %v245_v13  ;;  %v2319_v17 = vsub.f32 0.0, %v244_v14  ;;  %v243_v18 = vmul.f32 0.03125, %v227_v15 }
  0x83   :  { %v293_v19 = vmul.f32 %v2317_v16, %v2317_v16  ;;  %v292_v20 = vmul.f32 %v2319_v17, %v2319_v17  ;;  %v2325_v22 = vsub.f32 %v29_v1, %v243_v18  ;;  %v2330_v26 = vsub.f32 %v45_v3, %v243_v18 }
  0x84   :  { %v190_v21 = vpop.xlane.xlu1 %189  ;;  %v144_v28 = vpop.xlane.xlu2 %143 }
  0x85   :  { %v377_v23 = vsel %vm178_vm1, %v293_v19, 0.0  ;;  %v374_v24 = vsel %vm178_vm1, %v292_v20, 0.0  ;;  %v310_v25 = vsel %vm129_vm0, %v292_v20, 0.0  ;;  %v291_v31 = vmul.f32 %v2325_v22, %v2325_v22 }
  0x86   :  { %378 = vadd.xlane.f32.xlu2 %v377_v23  ;;  %375 = vadd.xlane.f32.xlu1 %v374_v24  ;;  %v141_v27 = vpop.xlane.xlu0 %140  ;;  %v355_v32 = vmul.f32 %v2330_v26, %v2330_v26  ;;  %v313_v34 = vsel %vm129_vm0, %v293_v19, 0.0 }
  0x87   :  { %311 = vadd.xlane.f32.xlu0 %v310_v25  ;;  %v230_v29 = vadd.f32 %v190_v21, %v141_v27  ;;  %v307_v35 = vsel %vm129_vm0, %v291_v31, 0.0 }
  0x88   :  { %v371_v36 = vsel %vm178_vm1, %v355_v32, 0.0  ;;  %v732_v32 = vld [vmem:[%s3499_s4 + $0x10] sm:$0xff] }
  0x89   :  { %v246_v30 = vmul.f32 0.03125, %v230_v29  ;;  %908 = vmatpush.msra.mxu1 %v732_v32 }
  0x8b   :  { %v2336_v33 = vsub.f32 0.0, %v246_v30 }
  0x8c   :  { %v196_v40 = vpop.xlane.xlu2 %195  ;;  %v147_v41 = vpop.xlane.xlu1 %146 }
  0x8d   :  { %v294_v39 = vmul.f32 %v2336_v33, %v2336_v33  ;;  %v232_v45 = vadd.f32 %v196_v40, %v147_v41 }
  0x8e   :  { %314 = vadd.xlane.f32.xlu1 %v313_v34  ;;  %308 = vadd.xlane.f32.xlu2 %v307_v35  ;;  %v193_v37 = vpop.xlane.xlu0 %192 }
  0x8f   :  { %372 = vadd.xlane.f32.xlu0 %v371_v36  ;;  %v231_v38 = vadd.f32 %v193_v37, %v144_v28  ;;  %v316_v44 = vsel %vm129_vm0, %v294_v39, 0.0  ;;  %v380_v46 = vsel %vm178_vm1, %v294_v39, 0.0  ;;  %v248_v47 = vmul.f32 0.03125, %v232_v45  ;;  %v733_v36 = vld [vmem:[%s3500_s5] sm:$0xff] }
  0x90   :  { %v730_v37 = vld [vmem:[%s3499_s4] sm:$0xff]  ;;  %797 = vmatpush.msra.mxu0 %v733_v36 }
  0x91   :  { %v247_v42 = vmul.f32 0.03125, %v231_v38  ;;  %v2350_v49 = vsub.f32 0.0, %v248_v47 }
  0x93   :  { %v2343_v43 = vsub.f32 0.0, %v247_v42  ;;  %v296_v53 = vmul.f32 %v2350_v49, %v2350_v49 }
  0x94   :  { %v199_v52 = vpop.xlane.xlu1 %198  ;;  %v202_v57 = vpop.xlane.xlu2 %201 }
  0x95   :  { %v295_v48 = vmul.f32 %v2343_v43, %v2343_v43  ;;  %v322_v55 = vsel %vm129_vm0, %v296_v53, 0.0  ;;  %v386_v62 = vsel %vm178_vm1, %v296_v53, 0.0 }
  0x96   :  { %161 = vadd.xlane.f32.xlu1 %v2244_v0  ;;  %317 = vadd.xlane.f32.xlu2 %v316_v44  ;;  %v150_v54 = vpop.xlane.xlu0 %149 }
  0x97   :  { %381 = vadd.xlane.f32.xlu0 %v380_v46  ;;  %v383_v50 = vsel %vm178_vm1, %v295_v48, 0.0  ;;  %v319_v51 = vsel %vm129_vm0, %v295_v48, 0.0  ;;  %v233_v56 = vadd.f32 %v199_v52, %v150_v54 }
  0x99   :  { %v249_v58 = vmul.f32 0.03125, %v233_v56 }
  0x9b   :  { %v2360_v60 = vsub.f32 0.0, %v249_v58 }
  0x9c   :  { %v153_v59 = vpop.xlane.xlu1 %152  ;;  %v156_v2 = vpop.xlane.xlu2 %155 }
  0x9d   :  { %v234_v61 = vadd.f32 %v202_v57, %v153_v59  ;;  %v297_v1 = vmul.f32 %v2360_v60, %v2360_v60 }
  0x9e   :  { %210 = vadd.xlane.f32.xlu2 %v2244_v0  ;;  %384 = vadd.xlane.f32.xlu1 %v383_v50  ;;  %v205_v3 = vpop.xlane.xlu0 %204 }
  0x9f   :  { %320 = vadd.xlane.f32.xlu0 %v319_v51  ;;  %v250_v63 = vmul.f32 0.03125, %v234_v61  ;;  %v325_v5 = vsel %vm129_vm0, %v297_v1, 0.0  ;;  %v235_v6 = vadd.f32 %v205_v3, %v156_v2  ;;  %v389_v7 = vsel %vm178_vm1, %v297_v1, 0.0 }
  0xa1   :  { %v2367_v4 = vsub.f32 0.0, %v250_v63  ;;  %v251_v8 = vmul.f32 0.03125, %v235_v6 }
  0xa3   :  { %v298_v9 = vmul.f32 %v2367_v4, %v2367_v4  ;;  %v2374_v10 = vsub.f32 0.0, %v251_v8 }
  0xa4   :  { %v208_v14 = vpop.xlane.xlu1 %207 }
  0xa5   :  { %v392_v11 = vsel %vm178_vm1, %v298_v9, 0.0  ;;  %v328_v12 = vsel %vm129_vm0, %v298_v9, 0.0  ;;  %v299_v13 = vmul.f32 %v2374_v10, %v2374_v10 }
  0xa6   :  { %164 = vadd.xlane.f32.xlu2 %v2244_v0  ;;  %323 = vadd.xlane.f32.xlu1 %v322_v55  ;;  %v159_v15 = vpop.xlane.xlu0 %158 }
  0xa7   :  { %213 = vadd.xlane.f32.xlu0 %v2244_v0  ;;  %v331_v18 = vsel %vm129_vm0, %v299_v13, 0.0  ;;  %v236_v19 = vadd.f32 %v208_v14, %v159_v15  ;;  %v395_v23 = vsel %vm178_vm1, %v299_v13, 0.0 }
  0xa9   :  { %v252_v20 = vmul.f32 0.03125, %v236_v19 }
  0xab   :  { %v2384_v21 = vsub.f32 0.0, %v252_v20  ;;  %v628_v20 = vld [vmem:[%s3501_s3] sm:$0x3] }
  0xad   :  { %v300_v24 = vmul.f32 %v2384_v21, %v2384_v21 }
  0xae   :  { %387 = vadd.xlane.f32.xlu2 %v386_v62  ;;  %216 = vadd.xlane.f32.xlu1 %v2244_v0 }
  0xaf   :  { %167 = vadd.xlane.f32.xlu0 %v2244_v0  ;;  %v334_v25 = vsel %vm129_vm0, %v300_v24, 0.0  ;;  %v398_v27 = vsel %vm178_vm1, %v300_v24, 0.0 }
  0xb6   :  { %170 = vadd.xlane.f32.xlu1 %v2244_v0  ;;  %326 = vadd.xlane.f32.xlu2 %v325_v5 }
  0xb7   :  { %390 = vadd.xlane.f32.xlu0 %v389_v7 }
  0xbe   :  { %393 = vadd.xlane.f32.xlu1 %v392_v11  ;;  %219 = vadd.xlane.f32.xlu2 %v2244_v0 }
  0xbf   :  { %329 = vadd.xlane.f32.xlu0 %v328_v12 }
  0xc6   :  { %173 = vadd.xlane.f32.xlu2 %v2244_v0  ;;  %332 = vadd.xlane.f32.xlu1 %v331_v18 }
  0xc7   :  { %222 = vadd.xlane.f32.xlu0 %v2244_v0 }
  0xce   :  { %396 = vadd.xlane.f32.xlu2 %v395_v23  ;;  %225 = vadd.xlane.f32.xlu1 %v2244_v0 }
  0xcf   :  { %176 = vadd.xlane.f32.xlu0 %v2244_v0  ;;  %v731_v0 = vld [vmem:[%s3499_s4 + $0x8] sm:$0xff] }
  0xd0   :  { %909 = vmatpush.msra.mxu1 %v731_v0  ;;  %v2443_v0 = vperm.slane %v628_v20, 0 }
  0xd2   :  { %910 = vmatpush.msra.mxu1 %v730_v37 }
  0xd6   :  { %335 = vadd.xlane.f32.xlu2 %v334_v25 }
  0xd7   :  { %399 = vadd.xlane.f32.xlu0 %v398_v27 }
  0xf9   :  { %v379_v28 = vpop.xlane.xlu2 %378  ;;  %v376_v29 = vpop.xlane.xlu1 %375 }
  0xfa   :  { %v312_v30 = vpop.xlane.xlu0 %311 }
  0xfb   :  { %v420_v31 = vadd.f32 %v376_v29, %v312_v30  ;;  %v627_v30 = vld [vmem:[%s3502_s2] sm:$0x3] }
  0xfd   :  { %v436_v34 = vmul.f32 0.03125, %v420_v31 }
  0xff   :  { %v452_v35 = vadd.f32 1e-05, %v436_v34 }
 0x101   :  { %2147 = vrsqrt.f32 %v452_v35  ;;  %v315_v38 = vpop.xlane.xlu1 %314  ;;  %v309_v39 = vpop.xlane.xlu2 %308  ;;  %vm483_vm4 = vweird.f32 %v452_v35 }
 0x102   :  { %v421_v40 = vadd.f32 %v379_v28, %v315_v38  ;;  %v373_v41 = vpop.xlane.xlu0 %372 }
 0x103   :  { %v419_v42 = vadd.f32 %v373_v41, %v309_v39 }
 0x104   :  { %v437_v44 = vmul.f32 0.03125, %v421_v40 }
 0x105   :  { %v435_v45 = vmul.f32 0.03125, %v419_v42 }
 0x106   :  { %v2405_v46 = vadd.f32 1e-05, %v437_v44 }
 0x107   :  { %v2407_v47 = vpop.eup %2147  ;;  %v451_v48 = vadd.f32 1e-05, %v435_v45  ;;  %v2453_v45 = vperm.slane %v627_v30, 0 }
 0x108   :  { %v478_v50 = vmul.f32 %v2407_v47, %v452_v35  ;;  %2149 = vrsqrt.f32 %v2405_v46  ;;  %vm484_vm2 = vweird.f32 %v2407_v47  ;;  %vm493_vm9 = vweird.f32 %v2405_v46 }
 0x109   :  { %2151 = vrsqrt.f32 %v451_v48  ;;  %v162_v51 = vpop.xlane.xlu1 %161  ;;  %v318_v52 = vpop.xlane.xlu2 %317  ;;  %vm2431_vm5 = vmor %vm483_vm4, %vm484_vm2  ;;  %vm473_vm6 = vweird.f32 %v451_v48 }
 0x10a   :  { %v479_v53 = vmul.f32 %v2407_v47, %v478_v50  ;;  %v382_v54 = vpop.xlane.xlu0 %381 }
 0x10b   :  { %v422_v55 = vadd.f32 %v382_v54, %v318_v52 }
 0x10c   :  { %v480_v56 = vmul.f32 0.5, %v479_v53 }
 0x10d   :  { %v438_v57 = vmul.f32 0.03125, %v422_v55 }
 0x10e   :  { %v2412_v58 = vpop.eup %2149  ;;  %v481_v1 = vsub.f32 1.5, %v480_v56 }
 0x10f   :  { %v2152_v59 = vpop.eup %2151  ;;  %v488_v61 = vmul.f32 %v2412_v58, %v2405_v46  ;;  %v2416_v62 = vadd.f32 1e-05, %v438_v57  ;;  %vm494_vm8 = vweird.f32 %v2412_v58 }
 0x110   :  { %v468_v63 = vmul.f32 %v2152_v59, %v451_v48  ;;  %v482_v13 = vmul.f32 %v2407_v47, %v481_v1  ;;  %vm474_vm3 = vweird.f32 %v2152_v59  ;;  %v2455_v48 = vperm.slane %v628_v20, 1  ;;  %vm2473_vm10 = vmor %vm493_vm9, %vm494_vm8 }
 0x111   :  { %v489_v2 = vmul.f32 %v2412_v58, %v488_v61  ;;  %2153 = vrsqrt.f32 %v2416_v62  ;;  %v211_v3 = vpop.xlane.xlu2 %210  ;;  %v385_v5 = vpop.xlane.xlu1 %384  ;;  %vm475_vm7 = vmor %vm473_vm6, %vm474_vm3  ;;  %vm503_vm12 = vweird.f32 %v2416_v62 }
 0x112   :  { %v469_v6 = vmul.f32 %v2152_v59, %v468_v63  ;;  %v237_v7 = vadd.f32 %v211_v3, %v162_v51  ;;  %v321_v8 = vpop.xlane.xlu0 %320  ;;  %v486_v35 = vsel %vm2431_vm5, %v2407_v47, %v482_v13  ;;  %v2457_v47 = vperm.slane %v627_v30, 1 }
 0x113   :  { %v423_v9 = vadd.f32 %v385_v5, %v321_v8  ;;  %v490_v14 = vmul.f32 0.5, %v489_v2  ;;  %v630_v53 = vmul.f32 %v486_v35, %v2319_v17 }
 0x114   :  { %v470_v11 = vmul.f32 0.5, %v469_v6  ;;  %v253_v12 = vmul.f32 0.03125, %v237_v7 }
 0x115   :  { %v439_v15 = vmul.f32 0.03125, %v423_v9  ;;  %v491_v31 = vsub.f32 1.5, %v490_v14  ;;  %v697_v2 = vmul.f32 %v2443_v0, %v630_v53  ;;  %v647_v6 = vmul.f32 %v2453_v45, %v630_v53 }
 0x116   :  { %v471_v18 = vsub.f32 1.5, %v470_v11  ;;  %v2422_v19 = vsub.f32 0.0, %v253_v12 }
 0x117   :  { %v2427_v23 = vpop.eup %2153  ;;  %v2429_v24 = vadd.f32 1e-05, %v439_v15  ;;  %v492_v54 = vmul.f32 %v2412_v58, %v491_v31 }
 0x118   :  { %v472_v27 = vmul.f32 %v2152_v59, %v471_v18  ;;  %v498_v28 = vmul.f32 %v2427_v23, %v2416_v62  ;;  %v301_v29 = vmul.f32 %v2422_v19, %v2422_v19  ;;  %vm504_vm11 = vweird.f32 %v2427_v23 }
 0x119   :  { %2155 = vrsqrt.f32 %v2429_v24  ;;  %v165_v32 = vpop.xlane.xlu2 %164  ;;  %v324_v34 = vpop.xlane.xlu1 %323  ;;  %v496_v7 = vsel %vm2473_vm10, %v2412_v58, %v492_v54  ;;  %vm2500_vm13 = vmor %vm503_vm12, %vm504_vm11  ;;  %vm513_vm15 = vweird.f32 %v2429_v24 }
 0x11a   :  { %v499_v36 = vmul.f32 %v2427_v23, %v498_v28  ;;  %v214_v37 = vpop.xlane.xlu0 %213  ;;  %v337_v38 = vsel %vm129_vm0, %v301_v29, 0.0  ;;  %v401_v39 = vsel %vm178_vm1, %v301_v29, 0.0  ;;  %v476_v40 = vsel %vm475_vm7, %v2152_v59, %v472_v27 }
 0x11b   :  { %v238_v41 = vadd.f32 %v214_v37, %v165_v32  ;;  %338 = vadd.xlane.f32.xlu1 %v337_v38  ;;  %402 = vadd.xlane.f32.xlu2 %v401_v39  ;;  %v679_v42 = vmul.f32 %v476_v40, %v2330_v26  ;;  %v629_v44 = vmul.f32 %v476_v40, %v2325_v22 }
 0x11c   :  { %v500_v26 = vmul.f32 0.5, %v499_v36  ;;  %v631_v20 = vmul.f32 %v496_v7, %v2317_v16  ;;  %v714_v27 = vadd.f32 %v2455_v48, %v697_v2  ;;  %v664_v28 = vadd.f32 %v2457_v47, %v647_v6 }
 0x11d   :  { %v254_v50 = vmul.f32 0.03125, %v238_v41  ;;  %v696_v51 = vmul.f32 %v2443_v0, %v679_v42  ;;  %v646_v52 = vmul.f32 %v2453_v45, %v629_v44 }
 0x11e   :  { %v501_v3 = vsub.f32 1.5, %v500_v26  ;;  %v648_v62 = vmul.f32 %v2453_v45, %v631_v20 }
 0x11f   :  { %v2464_v55 = vpop.eup %2155  ;;  %v2466_v22 = vsub.f32 0.0, %v254_v50  ;;  %v713_v56 = vadd.f32 %v2455_v48, %v696_v51  ;;  %v663_v57 = vadd.f32 %v2457_v47, %v646_v52 }
 0x120   :  { %v508_v59 = vmul.f32 %v2464_v55, %v2429_v24  ;;  %v502_v15 = vmul.f32 %v2427_v23, %v501_v3  ;;  %vm514_vm14 = vweird.f32 %v2464_v55  ;;  %v665_v52 = vadd.f32 %v2457_v47, %v648_v62 }
 0x121   :  { %2078 = vmatmul.msk.f32.vlgmr.msra.gmra.mxu0 %vm178_vm1, %v713_v56  ;;  %2094 = vmatmul.msk.f32.vlgmr.msra.gmra.mxu1 %vm129_vm0, %v663_v57  ;;  %v388_v61 = vpop.xlane.xlu2 %387  ;;  %v217_v63 = vpop.xlane.xlu1 %216  ;;  %v302_v1 = vmul.f32 %v2466_v22, %v2466_v22  ;;  %vm515_vm2 = vmor %vm513_vm15, %vm514_vm14 }
 0x122   :  { %v424_v46 = vadd.f32 %v388_v61, %v324_v34  ;;  %v168_v5 = vpop.xlane.xlu0 %167  ;;  %v509_v8 = vmul.f32 %v2464_v55, %v508_v59  ;;  %v698_v34 = vmul.f32 %v2443_v0, %v631_v20  ;;  %v506_v35 = vsel %vm2500_vm13, %v2427_v23, %v502_v15 }
 0x123   :  { %v239_v9 = vadd.f32 %v217_v63, %v168_v5  ;;  %v404_v11 = vsel %vm178_vm1, %v302_v1, 0.0  ;;  %v340_v12 = vsel %vm129_vm0, %v302_v1, 0.0  ;;  %v632_v44 = vmul.f32 %v506_v35, %v2336_v33 }
 0x124   :  { %v440_v13 = vmul.f32 0.03125, %v424_v46  ;;  %405 = vadd.xlane.f32.xlu1 %v404_v11  ;;  %341 = vadd.xlane.f32.xlu0 %v340_v12  ;;  %v510_v58 = vmul.f32 0.5, %v509_v8  ;;  %v715_v42 = vadd.f32 %v2455_v48, %v698_v34 }
 0x125   :  { %v255_v14 = vmul.f32 0.03125, %v239_v9  ;;  %v699_v57 = vmul.f32 %v2443_v0, %v632_v44  ;;  %v649_v61 = vmul.f32 %v2453_v45, %v632_v44 }
 0x126   :  { %v2491_v18 = vadd.f32 1e-05, %v440_v13  ;;  %v511_v36 = vsub.f32 1.5, %v510_v58 }
 0x127   :  { %v2494_v25 = vsub.f32 0.0, %v255_v14  ;;  %v716_v46 = vadd.f32 %v2455_v48, %v699_v57  ;;  %v666_v9 = vadd.f32 %v2457_v47, %v649_v61 }
 0x128   :  { %2157 = vrsqrt.f32 %v2491_v18  ;;  %v512_v50 = vmul.f32 %v2464_v55, %v511_v36  ;;  %vm523_vm4 = vweird.f32 %v2491_v18 }
 0x129   :  { %2079 = vmatmul.msk.f32.gmra.mxu0 %vm178_vm1, %v714_v27  ;;  %2095 = vmatmul.msk.f32.gmra.mxu1 %vm129_vm0, %v664_v28  ;;  %v171_v16 = vpop.xlane.xlu1 %170  ;;  %v327_v30 = vpop.xlane.xlu2 %326  ;;  %v303_v31 = vmul.f32 %v2494_v25, %v2494_v25 }
 0x12a   :  { %v391_v32 = vpop.xlane.xlu0 %390  ;;  %v516_v24 = vsel %vm515_vm2, %v2464_v55, %v512_v50 }
 0x12b   :  { %v425_v37 = vadd.f32 %v391_v32, %v327_v30  ;;  %v407_v38 = vsel %vm178_vm1, %v303_v31, 0.0  ;;  %v343_v39 = vsel %vm129_vm0, %v303_v31, 0.0  ;;  %v633_v5 = vmul.f32 %v516_v24, %v2343_v43 }
 0x12c   :  { %408 = vadd.xlane.f32.xlu0 %v407_v38  ;;  %344 = vadd.xlane.f32.xlu2 %v343_v39 }
 0x12d   :  { %v441_v40 = vmul.f32 0.03125, %v425_v37  ;;  %v700_v58 = vmul.f32 %v2443_v0, %v633_v5 }
 0x12e   :  { %v2158_v41 = vpop.eup %2157 }
 0x12f   :  { %v518_v23 = vmul.f32 %v2158_v41, %v2491_v18  ;;  %v2520_v51 = vadd.f32 1e-05, %v441_v40  ;;  %vm524_vm3 = vweird.f32 %v2158_v41  ;;  %v650_v18 = vmul.f32 %v2453_v45, %v633_v5 }
 0x130   :  { %vm525_vm5 = vmor %vm523_vm4, %vm524_vm3  ;;  %v717_v62 = vadd.f32 %v2455_v48, %v700_v58 }
 0x131   :  { %v519_v53 = vmul.f32 %v2158_v41, %v518_v23  ;;  %2159 = vrsqrt.f32 %v2520_v51  ;;  %2080 = vmatmul.msk.f32.gmra.mxu0 %vm178_vm1, %v715_v42  ;;  %2096 = vmatmul.msk.f32.gmra.mxu1 %vm129_vm0, %v665_v52  ;;  %v394_v54 = vpop.xlane.xlu1 %393  ;;  %v220_v26 = vpop.xlane.xlu2 %219  ;;  %v667_v35 = vadd.f32 %v2457_v47, %v650_v18  ;;  %vm533_vm7 = vweird.f32 %v2520_v51 }
 0x132   :  { %v240_v33 = vadd.f32 %v220_v26, %v171_v16  ;;  %v330_v56 = vpop.xlane.xlu0 %329 }
 0x133   :  { %v520_v59 = vmul.f32 0.5, %v519_v53  ;;  %v426_v17 = vadd.f32 %v394_v54, %v330_v56 }
 0x134   :  { %v256_v63 = vmul.f32 0.03125, %v240_v33 }
 0x135   :  { %v521_v1 = vsub.f32 1.5, %v520_v59  ;;  %v442_v2 = vmul.f32 0.03125, %v426_v17 }
 0x136   :  { %v2530_v3 = vsub.f32 0.0, %v256_v63 }
 0x137   :  { %v2160_v6 = vpop.eup %2159  ;;  %v522_v7 = vmul.f32 %v2158_v41, %v521_v1  ;;  %v2534_v8 = vadd.f32 1e-05, %v442_v2 }
 0x138   :  { %v528_v11 = vmul.f32 %v2160_v6, %v2520_v51  ;;  %v304_v55 = vmul.f32 %v2530_v3, %v2530_v3  ;;  %vm534_vm6 = vweird.f32 %v2160_v6 }
 0x139   :  { %2161 = vrsqrt.f32 %v2534_v8  ;;  %2081 = vmatmul.msk.f32.gmra.mxu0 %vm178_vm1, %v716_v46  ;;  %2097 = vmatmul.msk.f32.gmra.mxu1 %vm129_vm0, %v666_v9  ;;  %v174_v43 = vpop.xlane.xlu2 %173  ;;  %v333_v12 = vpop.xlane.xlu1 %332  ;;  %v526_v28 = vsel %vm525_vm5, %v2158_v41, %v522_v7  ;;  %vm2559_vm8 = vmor %vm533_vm7, %vm534_vm6  ;;  %vm543_vm10 = vweird.f32 %v2534_v8  ;;  %vm993_vm5 = vcmask 261120  }
 0x13a   :  { %v529_v13 = vmul.f32 %v2160_v6, %v528_v11  ;;  %v223_v14 = vpop.xlane.xlu0 %222  ;;  %v346_v15 = vsel %vm129_vm0, %v304_v55, 0.0  ;;  %v410_v20 = vsel %vm178_vm1, %v304_v55, 0.0  ;;  %v634_v31 = vmul.f32 %v526_v28, %v2350_v49 }
 0x13b   :  { %v241_v27 = vadd.f32 %v223_v14, %v174_v43  ;;  %347 = vadd.xlane.f32.xlu1 %v346_v15  ;;  %411 = vadd.xlane.f32.xlu2 %v410_v20 }
 0x13c   :  { %v530_v29 = vmul.f32 0.5, %v529_v13  ;;  %v701_v50 = vmul.f32 %v2443_v0, %v634_v31  ;;  %v651_v23 = vmul.f32 %v2453_v45, %v634_v31 }
 0x13d   :  { %v257_v16 = vmul.f32 0.03125, %v241_v27 }
 0x13e   :  { %v531_v30 = vsub.f32 1.5, %v530_v29  ;;  %v718_v24 = vadd.f32 %v2455_v48, %v701_v50  ;;  %v668_v63 = vadd.f32 %v2457_v47, %v651_v23 }
 0x13f   :  { %v2162_v32 = vpop.eup %2161  ;;  %v2549_v34 = vsub.f32 0.0, %v257_v16 }
 0x140   :  { %v532_v36 = vmul.f32 %v2160_v6, %v531_v30  ;;  %v538_v37 = vmul.f32 %v2162_v32, %v2534_v8  ;;  %vm544_vm9 = vweird.f32 %v2162_v32 }
 0x141   :  { %2082 = vmatmul.msk.f32.gmra.mxu0 %vm178_vm1, %v717_v62  ;;  %2098 = vmatmul.msk.f32.gmra.mxu1 %vm129_vm0, %v667_v35  ;;  %v397_v38 = vpop.xlane.xlu2 %396  ;;  %v226_v39 = vpop.xlane.xlu1 %225  ;;  %v305_v49 = vmul.f32 %v2549_v34, %v2549_v34  ;;  %vm545_vm11 = vmor %vm543_vm10, %vm544_vm9 }
 0x142   :  { %v539_v41 = vmul.f32 %v2162_v32, %v538_v37  ;;  %v427_v42 = vadd.f32 %v397_v38, %v333_v12  ;;  %v177_v44 = vpop.xlane.xlu0 %176  ;;  %v536_v54 = vsel %vm2559_vm8, %v2160_v6, %v532_v36 }
 0x143   :  { %v242_v51 = vadd.f32 %v226_v39, %v177_v44  ;;  %v413_v52 = vsel %vm178_vm1, %v305_v49, 0.0  ;;  %v349_v53 = vsel %vm129_vm0, %v305_v49, 0.0  ;;  %v635_v17 = vmul.f32 %v536_v54, %v2360_v60 }
 0x144   :  { %v540_v26 = vmul.f32 0.5, %v539_v41  ;;  %v443_v33 = vmul.f32 0.03125, %v427_v42  ;;  %414 = vadd.xlane.f32.xlu1 %v413_v52  ;;  %350 = vadd.xlane.f32.xlu0 %v349_v53 }
 0x145   :  { %v258_v56 = vmul.f32 0.03125, %v242_v51  ;;  %v702_v5 = vmul.f32 %v2443_v0, %v635_v17  ;;  %v652_v11 = vmul.f32 %v2453_v45, %v635_v17 }
 0x146   :  { %v541_v57 = vsub.f32 1.5, %v540_v26  ;;  %v459_v59 = vadd.f32 1e-05, %v443_v33 }
 0x147   :  { %v2570_v61 = vsub.f32 0.0, %v258_v56  ;;  %v719_v13 = vadd.f32 %v2455_v48, %v702_v5  ;;  %v669_v15 = vadd.f32 %v2457_v47, %v652_v11 }
 0x148   :  { %v542_v1 = vmul.f32 %v2162_v32, %v541_v57  ;;  %2163 = vrsqrt.f32 %v459_v59  ;;  %vm553_vm13 = vweird.f32 %v459_v59 }
 0x149   :  { %2083 = vmatmul.msk.f32.gmra.mxu0 %vm178_vm1, %v718_v24  ;;  %2099 = vmatmul.msk.f32.gmra.mxu1 %vm129_vm0, %v668_v63  ;;  %v336_v2 = vpop.xlane.xlu2 %335  ;;  %v306_v46 = vmul.f32 %v2570_v61, %v2570_v61  ;;  %v2611_v24 = vld [vmem:[%s3503_s7] sm:$0xff] }
 0x14a   :  { %v400_v60 = vpop.xlane.xlu0 %399  ;;  %v546_v55 = vsel %vm545_vm11, %v2162_v32, %v542_v1 }
 0x14b   :  { %v428_v6 = vadd.f32 %v400_v60, %v336_v2  ;;  %v416_v7 = vsel %vm178_vm1, %v306_v46, 0.0  ;;  %v352_v9 = vsel %vm129_vm0, %v306_v46, 0.0  ;;  %v636_v20 = vmul.f32 %v546_v55, %v2367_v4 }
 0x14c   :  { %417 = vadd.xlane.f32.xlu0 %v416_v7  ;;  %353 = vadd.xlane.f32.xlu2 %v352_v9  ;;  %v2614_v46 = vperm.slane %v2611_v24, 0 }
 0x14d   :  { %v444_v43 = vmul.f32 0.03125, %v428_v6  ;;  %v703_v18 = vmul.f32 %v2443_v0, %v636_v20  ;;  %v653_v28 = vmul.f32 %v2453_v45, %v636_v20 }
 0x14e   :  { %v2164_v12 = vpop.eup %2163 }
 0x14f   :  { %v548_v14 = vmul.f32 %v2164_v12, %v459_v59  ;;  %v460_v8 = vadd.f32 1e-05, %v444_v43  ;;  %vm554_vm12 = vweird.f32 %v2164_v12  ;;  %v720_v31 = vadd.f32 %v2455_v48, %v703_v18 }
 0x150   :  { %v670_v4 = vadd.f32 %v2457_v47, %v653_v28  ;;  %vm555_vm14 = vmor %vm553_vm13, %vm554_vm12 }
 0x151   :  { %v549_v58 = vmul.f32 %v2164_v12, %v548_v14  ;;  %2165 = vrsqrt.f32 %v460_v8  ;;  %2084 = vmatmul.msk.f32.gmra.mxu0 %vm178_vm1, %v719_v13  ;;  %2100 = vmatmul.msk.f32.gmra.mxu1 %vm129_vm0, %v669_v15  ;;  %vm563_vm15 = vweird.f32 %v460_v8 }
 0x153   :  { %v550_v27 = vmul.f32 0.5, %v549_v58 }
 0x155   :  { %v551_v29 = vsub.f32 1.5, %v550_v27 }
 0x157   :  { %v2166_v16 = vpop.eup %2165  ;;  %v552_v30 = vmul.f32 %v2164_v12, %v551_v29 }
 0x158   :  { %v558_v32 = vmul.f32 %v2166_v16, %v460_v8  ;;  %vm564_vm2 = vweird.f32 %v2166_v16 }
 0x159   :  { %2085 = vmatmul.msk.f32.gmra.mxu0 %vm178_vm1, %v720_v31  ;;  %2101 = vmatmul.msk.f32.gmra.mxu1 %vm129_vm0, %v670_v4  ;;  %v556_v62 = vsel %vm555_vm14, %v2164_v12, %v552_v30  ;;  %vm565_vm3 = vmor %vm563_vm15, %vm564_vm2 }
 0x15a   :  { %v559_v35 = vmul.f32 %v2166_v16, %v558_v32  ;;  %v637_v36 = vmul.f32 %v556_v62, %v2374_v10 }
 0x15c   :  { %v560_v37 = vmul.f32 0.5, %v559_v35  ;;  %v704_v38 = vmul.f32 %v2443_v0, %v637_v36  ;;  %v654_v39 = vmul.f32 %v2453_v45, %v637_v36 }
 0x15e   :  { %v561_v49 = vsub.f32 1.5, %v560_v37  ;;  %v721_v40 = vadd.f32 %v2455_v48, %v704_v38  ;;  %v671_v41 = vadd.f32 %v2457_v47, %v654_v39 }
 0x160   :  { %v562_v42 = vmul.f32 %v2166_v16, %v561_v49 }
 0x161   :  { %2086 = vmatmul.msk.f32.gmra.mxu0 %vm178_vm1, %v721_v40  ;;  %2102 = vmatmul.msk.f32.gmra.mxu1 %vm129_vm0, %v671_v41 }
 0x162   :  { %v566_v44 = vsel %vm565_vm3, %v2166_v16, %v562_v42 }
 0x163   :  { %v638_v10 = vmul.f32 %v566_v44, %v2384_v21 }
 0x165   :  { %v705_v50 = vmul.f32 %v2443_v0, %v638_v10  ;;  %v655_v23 = vmul.f32 %v2453_v45, %v638_v10 }
 0x167   :  { %v722_v51 = vadd.f32 %v2455_v48, %v705_v50  ;;  %v672_v52 = vadd.f32 %v2457_v47, %v655_v23 }
 0x169   :  { %2087 = vmatmul.msk.f32.gmra.mxu0 %vm178_vm1, %v722_v51  ;;  %2103 = vmatmul.msk.f32.gmra.mxu1 %vm129_vm0, %v672_v52 }
 0x18e   :  { %v339_v53 = vpop.xlane.xlu1 %338  ;;  %v403_v54 = vpop.xlane.xlu2 %402 }
 0x18f   :  { %v429_v26 = vadd.f32 %v403_v54, %v339_v53 }
 0x191   :  { %v445_v33 = vmul.f32 0.03125, %v429_v26 }
 0x193   :  { %v461_v56 = vadd.f32 1e-05, %v445_v33 }
 0x195   :  { %2167 = vrsqrt.f32 %v461_v56  ;;  %vm573_vm6 = vweird.f32 %v461_v56 }
 0x197   :  { %v406_v57 = vpop.xlane.xlu1 %405  ;;  %v342_v21 = vpop.xlane.xlu0 %341 }
 0x198   :  { %v430_v59 = vadd.f32 %v406_v57, %v342_v21 }
 0x19a   :  { %v446_v17 = vmul.f32 0.03125, %v430_v59 }
 0x19b   :  { %v2168_v63 = vpop.eup %2167 }
 0x19c   :  { %v568_v1 = vmul.f32 %v2168_v63, %v461_v56  ;;  %v462_v2 = vadd.f32 1e-05, %v446_v17  ;;  %vm574_vm4 = vweird.f32 %v2168_v63 }
 0x19d   :  { %vm575_vm7 = vmor %vm573_vm6, %vm574_vm4 }
 0x19e   :  { %v569_v60 = vmul.f32 %v2168_v63, %v568_v1  ;;  %2169 = vrsqrt.f32 %v462_v2  ;;  %v799_v5 = vpop.f32.mrf.mxu0  ;;  %v912_v6 = vpop.f32.mrf.mxu1  ;;  %vm583_vm9 = vweird.f32 %v462_v2 }
 0x19f   :  { %v913_v7 = vadd.f32 %v912_v6, %v799_v5  ;;  %v345_v9 = vpop.xlane.xlu2 %344  ;;  %v409_v11 = vpop.xlane.xlu0 %408 }
 0x1a0   :  { %v570_v55 = vmul.f32 0.5, %v569_v60  ;;  %v431_v43 = vadd.f32 %v409_v11, %v345_v9 }
 0x1a1   :  { %v961_v12 = vadd.f32 %v2614_v46, %v913_v7 }
 0x1a2   :  { %v571_v13 = vsub.f32 1.5, %v570_v55  ;;  %v447_v14 = vmul.f32 0.03125, %v431_v43 }
 0x1a3   :  { %v2617_v8 = vmax.f32 %v961_v12, 0.0 }
 0x1a4   :  { %v2170_v15 = vpop.eup %2169  ;;  %v572_v20 = vmul.f32 %v2168_v63, %v571_v13  ;;  %v463_v58 = vadd.f32 1e-05, %v447_v14 }
 0x1a5   :  { %v578_v27 = vmul.f32 %v2170_v15, %v462_v2  ;;  %v994_v18 = vsel %vm993_vm5, %v2617_v8, 0.0  ;;  %v1042_v28 = vmul.f32 %v2617_v8, %v2617_v8  ;;  %vm584_vm8 = vweird.f32 %v2170_v15 }
 0x1a6   :  { %2171 = vrsqrt.f32 %v463_v58  ;;  %v802_v29 = vpop.f32.mrf.mxu0  ;;  %v915_v16 = vpop.f32.mrf.mxu1  ;;  %995 = vadd.xlane.f32.xlu1 %v994_v18  ;;  %v576_v30 = vsel %vm575_vm7, %v2168_v63, %v572_v20  ;;  %vm585_vm10 = vmor %vm583_vm9, %vm584_vm8  ;;  %vm593_vm12 = vweird.f32 %v463_v58 }
 0x1a7   :  { %v579_v31 = vmul.f32 %v2170_v15, %v578_v27  ;;  %v916_v4 = vadd.f32 %v915_v16, %v802_v29  ;;  %v1058_v32 = vsel %vm993_vm5, %v1042_v28, 0.0  ;;  %v639_v62 = vmul.f32 %v576_v30, %v2422_v19 }
 0x1a8   :  { %1059 = vadd.xlane.f32.xlu2 %v1058_v32 }
 0x1a9   :  { %v580_v35 = vmul.f32 0.5, %v579_v31  ;;  %v962_v36 = vadd.f32 %v2614_v46, %v916_v4  ;;  %v706_v37 = vmul.f32 %v2443_v0, %v639_v62  ;;  %v656_v38 = vmul.f32 %v2453_v45, %v639_v62 }
 0x1ab   :  { %v581_v39 = vsub.f32 1.5, %v580_v35  ;;  %v2628_v49 = vmax.f32 %v962_v36, 0.0  ;;  %v723_v40 = vadd.f32 %v2455_v48, %v706_v37  ;;  %v673_v41 = vadd.f32 %v2457_v47, %v656_v38 }
 0x1ac   :  { %v2172_v42 = vpop.eup %2171 }
 0x1ad   :  { %v582_v44 = vmul.f32 %v2170_v15, %v581_v39  ;;  %v588_v19 = vmul.f32 %v2172_v42, %v463_v58  ;;  %v997_v10 = vsel %vm993_vm5, %v2628_v49, 0.0  ;;  %2088 = vmatmul.msk.f32.gmra.mxu0 %vm178_vm1, %v723_v40  ;;  %2104 = vmatmul.msk.f32.gmra.mxu1 %vm129_vm0, %v673_v41  ;;  %v1043_v51 = vmul.f32 %v2628_v49, %v2628_v49 }
 0x1ae   :  { %v805_v50 = vpop.f32.mrf.mxu0  ;;  %v918_v23 = vpop.f32.mrf.mxu1  ;;  %998 = vadd.xlane.f32.xlu0 %v997_v10  ;;  %vm594_vm11 = vweird.f32 %v2172_v42 }
 0x1af   :  { %v589_v52 = vmul.f32 %v2172_v42, %v588_v19  ;;  %v919_v53 = vadd.f32 %v918_v23, %v805_v50  ;;  %v348_v54 = vpop.xlane.xlu1 %347  ;;  %v412_v26 = vpop.xlane.xlu2 %411  ;;  %v586_v33 = vsel %vm585_vm10, %v2170_v15, %v582_v44  ;;  %v1061_v57 = vsel %vm993_vm5, %v1043_v51, 0.0  ;;  %vm595_vm13 = vmor %vm593_vm12, %vm594_vm11 }
 0x1b0   :  { %v432_v56 = vadd.f32 %v412_v26, %v348_v54  ;;  %v640_v21 = vmul.f32 %v586_v33, %v2466_v22  ;;  %1062 = vadd.xlane.f32.xlu1 %v1061_v57 }
 0x1b1   :  { %v590_v59 = vmul.f32 0.5, %v589_v52  ;;  %v963_v17 = vadd.f32 %v2614_v46, %v919_v53 }
 0x1b2   :  { %v448_v63 = vmul.f32 0.03125, %v432_v56  ;;  %v707_v1 = vmul.f32 %v2443_v0, %v640_v21  ;;  %v657_v2 = vmul.f32 %v2453_v45, %v640_v21 }
 0x1b3   :  { %v591_v60 = vsub.f32 1.5, %v590_v59  ;;  %v2643_v5 = vmax.f32 %v963_v17, 0.0 }
 0x1b4   :  { %v464_v6 = vadd.f32 1e-05, %v448_v63  ;;  %v724_v7 = vadd.f32 %v2455_v48, %v707_v1  ;;  %v674_v9 = vadd.f32 %v2457_v47, %v657_v2 }
 0x1b5   :  { %v592_v11 = vmul.f32 %v2172_v42, %v591_v60  ;;  %v1000_v22 = vsel %vm993_vm5, %v2643_v5, 0.0  ;;  %v1044_v55 = vmul.f32 %v2643_v5, %v2643_v5 }
 0x1b6   :  { %2173 = vrsqrt.f32 %v464_v6  ;;  %v808_v43 = vpop.f32.mrf.mxu0  ;;  %v921_v12 = vpop.f32.mrf.mxu1  ;;  %1001 = vadd.xlane.f32.xlu2 %v1000_v22  ;;  %2089 = vmatmul.msk.f32.gmra.mxu0 %vm178_vm1, %v724_v7  ;;  %vm603_vm15 = vweird.f32 %v464_v6 }
 0x1b7   :  { %v922_v13 = vadd.f32 %v921_v12, %v808_v43  ;;  %2105 = vmatmul.msk.f32.gmra.mxu1 %vm129_vm0, %v674_v9  ;;  %v415_v14 = vpop.xlane.xlu1 %414  ;;  %v351_v15 = vpop.xlane.xlu0 %350  ;;  %v1064_v20 = vsel %vm993_vm5, %v1044_v55, 0.0  ;;  %v596_v58 = vsel %vm595_vm13, %v2172_v42, %v592_v11 }
 0x1b8   :  { %v433_v27 = vadd.f32 %v415_v14, %v351_v15  ;;  %1065 = vadd.xlane.f32.xlu0 %v1064_v20  ;;  %v641_v18 = vmul.f32 %v596_v58, %v2494_v25 }
 0x1b9   :  { %v964_v28 = vadd.f32 %v2614_v46, %v922_v13 }
 0x1ba   :  { %v449_v29 = vmul.f32 0.03125, %v433_v27  ;;  %v708_v16 = vmul.f32 %v2443_v0, %v641_v18  ;;  %v658_v30 = vmul.f32 %v2453_v45, %v641_v18 }
 0x1bb   :  { %v2658_v31 = vmax.f32 %v964_v28, 0.0 }
 0x1bc   :  { %v2174_v4 = vpop.eup %2173  ;;  %v465_v32 = vadd.f32 1e-05, %v449_v29  ;;  %v725_v62 = vadd.f32 %v2455_v48, %v708_v16  ;;  %v675_v35 = vadd.f32 %v2457_v47, %v658_v30 }
 0x1bd   :  { %v598_v36 = vmul.f32 %v2174_v4, %v464_v6  ;;  %v1003_v37 = vsel %vm993_vm5, %v2658_v31, 0.0  ;;  %v1045_v25 = vmul.f32 %v2658_v31, %v2658_v31  ;;  %vm604_vm14 = vweird.f32 %v2174_v4 }
 0x1be   :  { %2175 = vrsqrt.f32 %v465_v32  ;;  %v811_v38 = vpop.f32.mrf.mxu0  ;;  %v924_v39 = vpop.f32.mrf.mxu1  ;;  %1004 = vadd.xlane.f32.xlu1 %v1003_v37  ;;  %2090 = vmatmul.msk.f32.gmra.mxu0 %vm178_vm1, %v725_v62  ;;  %vm605_vm2 = vmor %vm603_vm15, %vm604_vm14  ;;  %vm613_vm4 = vweird.f32 %v465_v32 }
 0x1bf   :  { %v599_v40 = vmul.f32 %v2174_v4, %v598_v36  ;;  %v925_v41 = vadd.f32 %v924_v39, %v811_v38  ;;  %2106 = vmatmul.msk.f32.gmra.mxu1 %vm129_vm0, %v675_v35  ;;  %v354_v42 = vpop.xlane.xlu2 %353  ;;  %v418_v44 = vpop.xlane.xlu0 %417  ;;  %v1067_v19 = vsel %vm993_vm5, %v1045_v25, 0.0 }
 0x1c0   :  { %v434_v10 = vadd.f32 %v418_v44, %v354_v42  ;;  %1068 = vadd.xlane.f32.xlu2 %v1067_v19 }
 0x1c1   :  { %v600_v50 = vmul.f32 0.5, %v599_v40  ;;  %v965_v23 = vadd.f32 %v2614_v46, %v925_v41 }
 0x1c2   :  { %v450_v51 = vmul.f32 0.03125, %v434_v10 }
 0x1c3   :  { %v601_v52 = vsub.f32 1.5, %v600_v50  ;;  %v2670_v53 = vmax.f32 %v965_v23, 0.0 }
 0x1c4   :  { %v2176_v54 = vpop.eup %2175  ;;  %v466_v26 = vadd.f32 1e-05, %v450_v51 }
 0x1c5   :  { %v602_v33 = vmul.f32 %v2174_v4, %v601_v52  ;;  %v608_v56 = vmul.f32 %v2176_v54, %v465_v32  ;;  %v1006_v57 = vsel %vm993_vm5, %v2670_v53, 0.0  ;;  %v1046_v17 = vmul.f32 %v2670_v53, %v2670_v53 }
 0x1c6   :  { %2177 = vrsqrt.f32 %v466_v26  ;;  %v814_v21 = vpop.f32.mrf.mxu0  ;;  %v927_v59 = vpop.f32.mrf.mxu1  ;;  %1007 = vadd.xlane.f32.xlu0 %v1006_v57  ;;  %vm614_vm3 = vweird.f32 %v2176_v54  ;;  %vm623_vm8 = vweird.f32 %v466_v26 }
 0x1c7   :  { %v609_v63 = vmul.f32 %v2176_v54, %v608_v56  ;;  %v928_v1 = vadd.f32 %v927_v59, %v814_v21  ;;  %v606_v2 = vsel %vm605_vm2, %v2174_v4, %v602_v33  ;;  %v1070_v60 = vsel %vm993_vm5, %v1046_v17, 0.0  ;;  %vm615_vm6 = vmor %vm613_vm4, %vm614_vm3 }
 0x1c8   :  { %v642_v7 = vmul.f32 %v606_v2, %v2530_v3  ;;  %1071 = vadd.xlane.f32.xlu1 %v1070_v60 }
 0x1c9   :  { %v610_v6 = vmul.f32 0.5, %v609_v63  ;;  %v966_v9 = vadd.f32 %v2614_v46, %v928_v1 }
 0x1ca   :  { %v709_v11 = vmul.f32 %v2443_v0, %v642_v7  ;;  %v659_v22 = vmul.f32 %v2453_v45, %v642_v7 }
 0x1cb   :  { %v611_v55 = vsub.f32 1.5, %v610_v6  ;;  %v2681_v43 = vmax.f32 %v966_v9, 0.0 }
 0x1cc   :  { %v2178_v12 = vpop.eup %2177  ;;  %v726_v13 = vadd.f32 %v2455_v48, %v709_v11  ;;  %v676_v14 = vadd.f32 %v2457_v47, %v659_v22 }
 0x1cd   :  { %v612_v15 = vmul.f32 %v2176_v54, %v611_v55  ;;  %v618_v3 = vmul.f32 %v2178_v12, %v466_v26  ;;  %v1009_v20 = vsel %vm993_vm5, %v2681_v43, 0.0  ;;  %v1047_v18 = vmul.f32 %v2681_v43, %v2681_v43 }
 0x1ce   :  { %v817_v58 = vpop.f32.mrf.mxu0  ;;  %v930_v27 = vpop.f32.mrf.mxu1  ;;  %1010 = vadd.xlane.f32.xlu2 %v1009_v20  ;;  %2091 = vmatmul.msk.f32.gmra.mxu0 %vm178_vm1, %v726_v13  ;;  %vm624_vm7 = vweird.f32 %v2178_v12  ;;  %v1430_v13 = vld [vmem:[%s3504_s6 + $0x10] sm:$0xff] }
 0x1cf   :  { %v619_v28 = vmul.f32 %v2178_v12, %v618_v3  ;;  %v931_v29 = vadd.f32 %v930_v27, %v817_v58  ;;  %2107 = vmatmul.msk.f32.gmra.mxu1 %vm129_vm0, %v676_v14  ;;  %v616_v16 = vsel %vm615_vm6, %v2176_v54, %v612_v15  ;;  %v1073_v30 = vsel %vm993_vm5, %v1047_v18, 0.0  ;;  %vm625_vm9 = vmor %vm623_vm8, %vm624_vm7  ;;  %v1429_v3 = vld [vmem:[%s3504_s6 + $0x8] sm:$0xff]  ;;  %v1428_v18 = vld [vmem:[%s3504_s6] sm:$0xff] }
 0x1d0   :  { %v643_v4 = vmul.f32 %v616_v16, %v2549_v34  ;;  %1074 = vadd.xlane.f32.xlu0 %v1073_v30 }
 0x1d1   :  { %v620_v32 = vmul.f32 0.5, %v619_v28  ;;  %v967_v62 = vadd.f32 %v2614_v46, %v931_v29 }
 0x1d2   :  { %v710_v35 = vmul.f32 %v2443_v0, %v643_v4  ;;  %v660_v36 = vmul.f32 %v2453_v45, %v643_v4 }
 0x1d3   :  { %v621_v37 = vsub.f32 1.5, %v620_v32  ;;  %v2696_v25 = vmax.f32 %v967_v62, 0.0 }
 0x1d4   :  { %v727_v38 = vadd.f32 %v2455_v48, %v710_v35  ;;  %v677_v39 = vadd.f32 %v2457_v47, %v660_v36 }
 0x1d5   :  { %v622_v40 = vmul.f32 %v2178_v12, %v621_v37  ;;  %v1012_v34 = vsel %vm993_vm5, %v2696_v25, 0.0  ;;  %v1048_v41 = vmul.f32 %v2696_v25, %v2696_v25 }
 0x1d6   :  { %v820_v42 = vpop.f32.mrf.mxu0  ;;  %v933_v44 = vpop.f32.mrf.mxu1  ;;  %1013 = vadd.xlane.f32.xlu1 %v1012_v34  ;;  %2092 = vmatmul.msk.f32.gmra.mxu0 %vm178_vm1, %v727_v38 }
 0x1d7   :  { %v934_v19 = vadd.f32 %v933_v44, %v820_v42  ;;  %2108 = vmatmul.msk.f32.gmra.mxu1 %vm129_vm0, %v677_v39  ;;  %v1076_v10 = vsel %vm993_vm5, %v1048_v41, 0.0  ;;  %v626_v50 = vsel %vm625_vm9, %v2178_v12, %v622_v40  ;;  %v1431_v12 = vld [vmem:[%s3504_s6 + $0x18] sm:$0xff] }
 0x1d8   :  { %1077 = vadd.xlane.f32.xlu2 %v1076_v10  ;;  %v644_v23 = vmul.f32 %v626_v50, %v2570_v61  ;;  %1493 = vmatpush.msra.mxu2 %v1431_v12 }
 0x1d9   :  { %v968_v51 = vadd.f32 %v2614_v46, %v934_v19 }
 0x1da   :  { %v711_v52 = vmul.f32 %v2443_v0, %v644_v23  ;;  %v661_v54 = vmul.f32 %v2453_v45, %v644_v23  ;;  %1494 = vmatpush.msra.mxu2 %v1430_v13 }
 0x1db   :  { %v2711_v26 = vmax.f32 %v968_v51, 0.0 }
 0x1dc   :  { %v728_v33 = vadd.f32 %v2455_v48, %v711_v52  ;;  %v678_v56 = vadd.f32 %v2457_v47, %v661_v54  ;;  %1495 = vmatpush.msra.mxu2 %v1429_v3 }
 0x1dd   :  { %v1015_v57 = vsel %vm993_vm5, %v2711_v26, 0.0  ;;  %v1049_v21 = vmul.f32 %v2711_v26, %v2711_v26 }
 0x1de   :  { %v823_v59 = vpop.f32.mrf.mxu0  ;;  %v936_v61 = vpop.f32.mrf.mxu1  ;;  %1016 = vadd.xlane.f32.xlu0 %v1015_v57  ;;  %2093 = vmatmul.msk.f32.gmra.mxu0 %vm178_vm1, %v728_v33 }
 0x1df   :  { %v937_v0 = vadd.f32 %v936_v61, %v823_v59  ;;  %2109 = vmatmul.msk.f32.gmra.mxu1 %vm129_vm0, %v678_v56  ;;  %v1079_v45 = vsel %vm993_vm5, %v1049_v21, 0.0  ;;  %1496 = vmatpush.msra.mxu2 %v1428_v18 }
 0x1e0   :  { %1080 = vadd.xlane.f32.xlu1 %v1079_v45 }
 0x1e1   :  { %v969_v48 = vadd.f32 %v2614_v46, %v937_v0 }
 0x1e3   :  { %v2723_v47 = vmax.f32 %v969_v48, 0.0 }
 0x1e5   :  { %v1018_v17 = vsel %vm993_vm5, %v2723_v47, 0.0  ;;  %v1050_v63 = vmul.f32 %v2723_v47, %v2723_v47 }
 0x1e6   :  { %1019 = vadd.xlane.f32.xlu2 %v1018_v17  ;;  %v826_v1 = vpop.f32.mrf.mxu0  ;;  %v939_v2 = vpop.f32.mrf.mxu1 }
 0x1e7   :  { %v940_v60 = vadd.f32 %v939_v2, %v826_v1  ;;  %v1082_v7 = vsel %vm993_vm5, %v1050_v63, 0.0 }
 0x1e8   :  { %1083 = vadd.xlane.f32.xlu0 %v1082_v7 }
 0x1e9   :  { %v970_v6 = vadd.f32 %v2614_v46, %v940_v60 }
 0x1eb   :  { %v2731_v9 = vmax.f32 %v970_v6, 0.0 }
 0x1ed   :  { %v1021_v11 = vsel %vm993_vm5, %v2731_v9, 0.0  ;;  %v1051_v22 = vmul.f32 %v2731_v9, %v2731_v9 }
 0x1ee   :  { %1022 = vadd.xlane.f32.xlu1 %v1021_v11  ;;  %v2780_v11 = vperm.slane %v2611_v24, 1 }
 0x1ef   :  { %v1085_v55 = vsel %vm993_vm5, %v1051_v22, 0.0 }
 0x1f0   :  { %1086 = vadd.xlane.f32.xlu2 %v1085_v55 }
 0x219   :  { %v996_v14 = vpop.xlane.xlu1 %995 }
 0x21a   :  { %v2744_v15 = vmul.f32 0.03125, %v996_v14 }
 0x21b   :  { %v1060_v20 = vpop.xlane.xlu2 %1059 }
 0x21c   :  { %v1138_v58 = vmul.f32 %v2744_v15, %v2744_v15  ;;  %v1122_v27 = vmul.f32 0.03125, %v1060_v20  ;;  %v1186_v22 = vsub.f32 %v2617_v8, %v2744_v15 }
 0x21e   :  { %v1154_v28 = vsub.f32 %v1122_v27, %v1138_v58 }
 0x220   :  { %v1170_v29 = vmax.f32 %v1154_v28, 0.0  ;;  %v2789_v28 = vperm.slane %v2611_v24, 2 }
 0x221   :  { %v999_v16 = vpop.xlane.xlu0 %998 }
 0x222   :  { %v1202_v30 = vadd.f32 1e-05, %v1170_v29  ;;  %v2754_v4 = vmul.f32 0.03125, %v999_v16 }
 0x223   :  { %v1063_v62 = vpop.xlane.xlu1 %1062 }
 0x224   :  { %2179 = vrsqrt.f32 %v1202_v30  ;;  %v1139_v32 = vmul.f32 %v2754_v4, %v2754_v4  ;;  %v1123_v35 = vmul.f32 0.03125, %v1063_v62  ;;  %vm1224_vm1 = vweird.f32 %v1202_v30 }
 0x226   :  { %v1155_v36 = vsub.f32 %v1123_v35, %v1139_v32 }
 0x228   :  { %v1171_v37 = vmax.f32 %v1155_v36, 0.0 }
 0x229   :  { %v1002_v38 = vpop.xlane.xlu2 %1001 }
 0x22a   :  { %v2180_v39 = vpop.eup %2179  ;;  %v2758_v40 = vmul.f32 0.03125, %v1002_v38  ;;  %v829_v34 = vpop.f32.mrf.mxu0  ;;  %v2760_v44 = vadd.f32 1e-05, %v1171_v37 }
 0x22b   :  { %v942_v41 = vpop.f32.mrf.mxu1  ;;  %v1219_v42 = vmul.f32 %v2180_v39, %v1202_v30  ;;  %v1066_v10 = vpop.xlane.xlu0 %1065  ;;  %vm1225_vm0 = vweird.f32 %v2180_v39 }
 0x22c   :  { %v943_v19 = vadd.f32 %v942_v41, %v829_v34  ;;  %v1140_v50 = vmul.f32 %v2758_v40, %v2758_v40  ;;  %v1124_v23 = vmul.f32 0.03125, %v1066_v10  ;;  %2181 = vrsqrt.f32 %v2760_v44  ;;  %vm1226_vm10 = vmor %vm1224_vm1, %vm1225_vm0 }
 0x22d   :  { %v1220_v51 = vmul.f32 %v2180_v39, %v1219_v42  ;;  %vm1234_vm12 = vweird.f32 %v2760_v44 }
 0x22e   :  { %v971_v52 = vadd.f32 %v2614_v46, %v943_v19  ;;  %v1156_v54 = vsub.f32 %v1124_v23, %v1140_v50  ;;  %v1187_v19 = vsub.f32 %v2628_v49, %v2754_v4 }
 0x22f   :  { %v1221_v33 = vmul.f32 0.5, %v1220_v51 }
 0x230   :  { %v2766_v56 = vmax.f32 %v971_v52, 0.0  ;;  %v1172_v57 = vmax.f32 %v1156_v54, 0.0 }
 0x231   :  { %v1222_v21 = vsub.f32 1.5, %v1221_v33  ;;  %v1005_v59 = vpop.xlane.xlu1 %1004 }
 0x232   :  { %v1024_v61 = vsel %vm993_vm5, %v2766_v56, 0.0  ;;  %v1052_v0 = vmul.f32 %v2766_v56, %v2766_v56  ;;  %v2772_v45 = vadd.f32 1e-05, %v1172_v57  ;;  %v2774_v48 = vmul.f32 0.03125, %v1005_v59  ;;  %v2182_v17 = vpop.eup %2181 }
 0x233   :  { %1025 = vadd.xlane.f32.xlu0 %v1024_v61  ;;  %v1223_v63 = vmul.f32 %v2180_v39, %v1222_v21  ;;  %v1069_v1 = vpop.xlane.xlu2 %1068  ;;  %v832_v2 = vpop.f32.mrf.mxu0  ;;  %v1229_v7 = vmul.f32 %v2182_v17, %v2760_v44  ;;  %vm1235_vm11 = vweird.f32 %v2182_v17 }
 0x234   :  { %v1088_v60 = vsel %vm993_vm5, %v1052_v0, 0.0  ;;  %2183 = vrsqrt.f32 %v2772_v45  ;;  %v945_v6 = vpop.f32.mrf.mxu1  ;;  %v1141_v55 = vmul.f32 %v2774_v48, %v2774_v48  ;;  %v1125_v12 = vmul.f32 0.03125, %v1069_v1  ;;  %vm1236_vm13 = vmor %vm1234_vm12, %vm1235_vm11 }
 0x235   :  { %1089 = vadd.xlane.f32.xlu1 %v1088_v60  ;;  %v946_v13 = vadd.f32 %v945_v6, %v832_v2  ;;  %v1230_v14 = vmul.f32 %v2182_v17, %v1229_v7  ;;  %v1227_v3 = vsel %vm1226_vm10, %v2180_v39, %v1223_v63  ;;  %vm1244_vm15 = vweird.f32 %v2772_v45 }
 0x236   :  { %v1157_v20 = vsub.f32 %v1125_v12, %v1141_v55  ;;  %v1378_v27 = vmul.f32 %v1227_v3, %v1186_v22  ;;  %v1188_v55 = vsub.f32 %v2643_v5, %v2758_v40 }
 0x237   :  { %v972_v58 = vadd.f32 %v2614_v46, %v946_v13  ;;  %v1231_v18 = vmul.f32 0.5, %v1230_v14 }
 0x238   :  { %v1173_v29 = vmax.f32 %v1157_v20, 0.0  ;;  %v1395_v15 = vmul.f32 %v2780_v11, %v1378_v27 }
 0x239   :  { %v2791_v16 = vmax.f32 %v972_v58, 0.0  ;;  %v1008_v8 = vpop.xlane.xlu0 %1007  ;;  %v1232_v32 = vsub.f32 1.5, %v1231_v18 }
 0x23a   :  { %v2184_v30 = vpop.eup %2183  ;;  %v2794_v62 = vmul.f32 0.03125, %v1008_v8  ;;  %v2797_v36 = vadd.f32 1e-05, %v1173_v29  ;;  %v1412_v42 = vadd.f32 %v2789_v28, %v1395_v15 }
 0x23b   :  { %v1239_v35 = vmul.f32 %v2184_v30, %v2772_v45  ;;  %v1027_v37 = vsel %vm993_vm5, %v2791_v16, 0.0  ;;  %v835_v24 = vpop.f32.mrf.mxu0  ;;  %v1233_v38 = vmul.f32 %v2182_v17, %v1232_v32  ;;  %v1072_v34 = vpop.xlane.xlu1 %1071  ;;  %v1053_v44 = vmul.f32 %v2791_v16, %v2791_v16 }
 0x23c   :  { %v1142_v39 = vmul.f32 %v2794_v62, %v2794_v62  ;;  %1028 = vadd.xlane.f32.xlu2 %v1027_v37  ;;  %v948_v41 = vpop.f32.mrf.mxu1  ;;  %2185 = vrsqrt.f32 %v2797_v36  ;;  %v1126_v50 = vmul.f32 0.03125, %v1072_v34  ;;  %2110 = vmatmul.msk.f32.vlgmr.msra.gmra.mxu2 %vm993_vm5, %v1412_v42  ;;  %vm1245_vm14 = vweird.f32 %v2184_v30 }
 0x23d   :  { %v1240_v10 = vmul.f32 %v2184_v30, %v1239_v35  ;;  %v949_v23 = vadd.f32 %v948_v41, %v835_v24  ;;  %v1237_v51 = vsel %vm1236_vm13, %v2182_v17, %v1233_v38  ;;  %v1091_v21 = vsel %vm993_vm5, %v1053_v44, 0.0  ;;  %vm1246_vm2 = vmor %vm1244_vm15, %vm1245_vm14 }
 0x23e   :  { %v1158_v54 = vsub.f32 %v1126_v50, %v1142_v39  ;;  %v1379_v33 = vmul.f32 %v1237_v51, %v1187_v19  ;;  %1092 = vadd.xlane.f32.xlu0 %v1091_v21  ;;  %vm1254_vm4 = vweird.f32 %v2797_v36  ;;  %v1189_v42 = vsub.f32 %v2658_v31, %v2774_v48 }
 0x23f   :  { %v1241_v52 = vmul.f32 0.5, %v1240_v10  ;;  %v973_v57 = vadd.f32 %v2614_v46, %v949_v23 }
 0x240   :  { %v1174_v4 = vmax.f32 %v1158_v54, 0.0  ;;  %v1396_v61 = vmul.f32 %v2780_v11, %v1379_v33 }
 0x241   :  { %v1242_v49 = vsub.f32 1.5, %v1241_v52  ;;  %v1011_v59 = vpop.xlane.xlu2 %1010  ;;  %v2814_v0 = vmax.f32 %v973_v57, 0.0 }
 0x242   :  { %v2816_v63 = vmul.f32 0.03125, %v1011_v59  ;;  %v2186_v1 = vpop.eup %2185  ;;  %v2818_v2 = vadd.f32 1e-05, %v1174_v4  ;;  %v1413_v60 = vadd.f32 %v2789_v28, %v1396_v61 }
 0x243   :  { %v1243_v17 = vmul.f32 %v2184_v30, %v1242_v49  ;;  %v1249_v7 = vmul.f32 %v2186_v1, %v2797_v36  ;;  %v1075_v22 = vpop.xlane.xlu0 %1074  ;;  %v1030_v12 = vsel %vm993_vm5, %v2814_v0, 0.0  ;;  %v1054_v45 = vmul.f32 %v2814_v0, %v2814_v0 }
 0x244   :  { %v1143_v6 = vmul.f32 %v2816_v63, %v2816_v63  ;;  %2187 = vrsqrt.f32 %v2818_v2  ;;  %v1127_v13 = vmul.f32 0.03125, %v1075_v22  ;;  %1031 = vadd.xlane.f32.xlu1 %v1030_v12  ;;  %2111 = vmatmul.msk.f32.gmra.mxu2 %vm993_vm5, %v1413_v60  ;;  %vm1255_vm3 = vweird.f32 %v2186_v1 }
 0x245   :  { %v1250_v14 = vmul.f32 %v2186_v1, %v1249_v7  ;;  %v1247_v3 = vsel %vm1246_vm2, %v2184_v30, %v1243_v17  ;;  %v1094_v5 = vsel %vm993_vm5, %v1054_v45, 0.0  ;;  %vm1256_vm6 = vmor %vm1254_vm4, %vm1255_vm3  ;;  %v1190_v22 = vsub.f32 %v2670_v53, %v2794_v62 }
 0x246   :  { %v1159_v20 = vsub.f32 %v1127_v13, %v1143_v6  ;;  %v1380_v58 = vmul.f32 %v1247_v3, %v1188_v55  ;;  %1095 = vadd.xlane.f32.xlu2 %v1094_v5  ;;  %vm1264_vm8 = vweird.f32 %v2818_v2 }
 0x247   :  { %v1251_v27 = vmul.f32 0.5, %v1250_v14 }
 0x248   :  { %v1175_v40 = vmax.f32 %v1159_v20, 0.0  ;;  %v1397_v29 = vmul.f32 %v2780_v11, %v1380_v58 }
 0x249   :  { %v1014_v18 = vpop.xlane.xlu1 %1013  ;;  %v1252_v8 = vsub.f32 1.5, %v1251_v27 }
 0x24a   :  { %v2835_v15 = vmul.f32 0.03125, %v1014_v18  ;;  %v2188_v32 = vpop.eup %2187  ;;  %v2837_v35 = vadd.f32 1e-05, %v1175_v40  ;;  %v1414_v30 = vadd.f32 %v2789_v28, %v1397_v29 }
 0x24b   :  { %v1078_v37 = vpop.xlane.xlu2 %1077  ;;  %v838_v24 = vpop.f32.mrf.mxu0  ;;  %v1253_v38 = vmul.f32 %v2186_v1, %v1252_v8  ;;  %v1259_v39 = vmul.f32 %v2188_v32, %v2818_v2  ;;  %vm1265_vm7 = vweird.f32 %v2188_v32 }
 0x24c   :  { %v1144_v34 = vmul.f32 %v2835_v15, %v2835_v15  ;;  %v951_v41 = vpop.f32.mrf.mxu1  ;;  %2189 = vrsqrt.f32 %v2837_v35  ;;  %v1128_v19 = vmul.f32 0.03125, %v1078_v37  ;;  %2112 = vmatmul.msk.f32.gmra.mxu2 %vm993_vm5, %v1414_v30  ;;  %vm1266_vm9 = vmor %vm1264_vm8, %vm1265_vm7  ;;  %vm1274_vm1 = vweird.f32 %v2837_v35 }
 0x24d   :  { %v1260_v10 = vmul.f32 %v2188_v32, %v1259_v39  ;;  %v952_v50 = vadd.f32 %v951_v41, %v838_v24  ;;  %v1257_v23 = vsel %vm1256_vm6, %v2186_v1, %v1253_v38 }
 0x24e   :  { %v1160_v44 = vsub.f32 %v1128_v19, %v1144_v34  ;;  %v1381_v36 = vmul.f32 %v1257_v23, %v1189_v42  ;;  %v1191_v42 = vsub.f32 %v2681_v43, %v2816_v63 }
 0x24f   :  { %v1261_v51 = vmul.f32 0.5, %v1260_v10  ;;  %v974_v52 = vadd.f32 %v2614_v46, %v952_v50 }
 0x250   :  { %v1176_v54 = vmax.f32 %v1160_v44, 0.0  ;;  %v1398_v57 = vmul.f32 %v2780_v11, %v1381_v36 }
 0x251   :  { %v1017_v33 = vpop.xlane.xlu0 %1016  ;;  %v1262_v21 = vsub.f32 1.5, %v1261_v51  ;;  %v2850_v31 = vmax.f32 %v974_v52, 0.0 }
 0x252   :  { %v2852_v48 = vmul.f32 0.03125, %v1017_v33  ;;  %v2190_v49 = vpop.eup %2189  ;;  %v2854_v4 = vadd.f32 1e-05, %v1176_v54  ;;  %v1415_v1 = vadd.f32 %v2789_v28, %v1398_v57 }
 0x253   :  { %v1081_v59 = vpop.xlane.xlu1 %1080  ;;  %v841_v61 = vpop.f32.mrf.mxu0  ;;  %v1263_v17 = vmul.f32 %v2188_v32, %v1262_v21  ;;  %v1269_v60 = vmul.f32 %v2190_v49, %v2837_v35  ;;  %v1033_v13 = vsel %vm993_vm5, %v2850_v31, 0.0  ;;  %v1055_v45 = vmul.f32 %v2850_v31, %v2850_v31 }
 0x254   :  { %v1145_v7 = vmul.f32 %v2852_v48, %v2852_v48  ;;  %v954_v6 = vpop.f32.mrf.mxu1  ;;  %2191 = vrsqrt.f32 %v2854_v4  ;;  %v1129_v55 = vmul.f32 0.03125, %v1081_v59  ;;  %2113 = vmatmul.msk.f32.gmra.mxu2 %vm993_vm5, %v1415_v1  ;;  %1034 = vadd.xlane.f32.xlu0 %v1033_v13  ;;  %vm1275_vm0 = vweird.f32 %v2190_v49 }
 0x255   :  { %v1270_v12 = vmul.f32 %v2190_v49, %v1269_v60  ;;  %v955_v14 = vadd.f32 %v954_v6, %v841_v61  ;;  %v1267_v20 = vsel %vm1266_vm9, %v2188_v32, %v1263_v17  ;;  %v1097_v2 = vsel %vm993_vm5, %v1055_v45, 0.0  ;;  %vm1276_vm10 = vmor %vm1274_vm1, %vm1275_vm0 }
 0x256   :  { %v1161_v3 = vsub.f32 %v1129_v55, %v1145_v7  ;;  %v1382_v58 = vmul.f32 %v1267_v20, %v1190_v22  ;;  %1098 = vadd.xlane.f32.xlu1 %v1097_v2  ;;  %vm1284_vm12 = vweird.f32 %v2854_v4 }
 0x257   :  { %v1271_v53 = vmul.f32 0.5, %v1270_v12  ;;  %v975_v62 = vadd.f32 %v2614_v46, %v955_v14  ;;  %v1192_v12 = vsub.f32 %v2696_v25, %v2835_v15 }
 0x258   :  { %v1177_v27 = vmax.f32 %v1161_v3, 0.0  ;;  %v1399_v8 = vmul.f32 %v2780_v11, %v1382_v58 }
 0x259   :  { %v1020_v5 = vpop.xlane.xlu2 %1019  ;;  %v1272_v40 = vsub.f32 1.5, %v1271_v53  ;;  %v2871_v18 = vmax.f32 %v975_v62, 0.0 }
 0x25a   :  { %v2873_v29 = vmul.f32 0.03125, %v1020_v5  ;;  %v2192_v37 = vpop.eup %2191  ;;  %v2876_v24 = vadd.f32 1e-05, %v1177_v27  ;;  %v1416_v44 = vadd.f32 %v2789_v28, %v1399_v8  ;;  %v1193_v8 = vsub.f32 %v2711_v26, %v2852_v48 }
 0x25b   :  { %v844_v32 = vpop.f32.mrf.mxu0  ;;  %v1084_v30 = vpop.xlane.xlu0 %1083  ;;  %v1273_v38 = vmul.f32 %v2190_v49, %v1272_v40  ;;  %v1279_v39 = vmul.f32 %v2192_v37, %v2854_v4  ;;  %v1036_v19 = vsel %vm993_vm5, %v2871_v18, 0.0  ;;  %v1056_v36 = vmul.f32 %v2871_v18, %v2871_v18 }
 0x25c   :  { %v1146_v34 = vmul.f32 %v2873_v29, %v2873_v29  ;;  %v957_v41 = vpop.f32.mrf.mxu1  ;;  %2193 = vrsqrt.f32 %v2876_v24  ;;  %1037 = vadd.xlane.f32.xlu2 %v1036_v19  ;;  %v1130_v23 = vmul.f32 0.03125, %v1084_v30  ;;  %2114 = vmatmul.msk.f32.gmra.mxu2 %vm993_vm5, %v1416_v44  ;;  %vm1285_vm11 = vweird.f32 %v2192_v37 }
 0x25d   :  { %v1280_v10 = vmul.f32 %v2192_v37, %v1279_v39  ;;  %v958_v50 = vadd.f32 %v957_v41, %v844_v32  ;;  %v1277_v51 = vsel %vm1276_vm10, %v2190_v49, %v1273_v38  ;;  %v1100_v54 = vsel %vm993_vm5, %v1056_v36, 0.0  ;;  %vm1286_vm13 = vmor %vm1284_vm12, %vm1285_vm11 }
 0x25e   :  { %v1162_v63 = vsub.f32 %v1130_v23, %v1146_v34  ;;  %v1383_v35 = vmul.f32 %v1277_v51, %v1191_v42  ;;  %1101 = vadd.xlane.f32.xlu0 %v1100_v54  ;;  %vm1294_vm15 = vweird.f32 %v2876_v24  ;;  %v1194_v26 = vsub.f32 %v2723_v47, %v2873_v29 }
 0x25f   :  { %v1281_v52 = vmul.f32 0.5, %v1280_v10  ;;  %v976_v43 = vadd.f32 %v2614_v46, %v958_v50 }
 0x260   :  { %v1178_v59 = vmax.f32 %v1162_v63, 0.0  ;;  %v1400_v17 = vmul.f32 %v2780_v11, %v1383_v35 }
 0x261   :  { %v1023_v33 = vpop.xlane.xlu1 %1022  ;;  %v1282_v57 = vsub.f32 1.5, %v1281_v52  ;;  %v2893_v21 = vmax.f32 %v976_v43, 0.0 }
 0x262   :  { %v2895_v61 = vmul.f32 0.03125, %v1023_v33  ;;  %v2194_v1 = vpop.eup %2193  ;;  %v1210_v7 = vadd.f32 1e-05, %v1178_v59  ;;  %v1417_v14 = vadd.f32 %v2789_v28, %v1400_v17 }
 0x263   :  { %v1087_v49 = vpop.xlane.xlu2 %1086  ;;  %v1283_v46 = vmul.f32 %v2192_v37, %v1282_v57  ;;  %v1289_v60 = vmul.f32 %v2194_v1, %v2876_v24  ;;  %v1039_v55 = vsel %vm993_vm5, %v2893_v21, 0.0  ;;  %v1057_v4 = vmul.f32 %v2893_v21, %v2893_v21 }
 0x264   :  { %v1147_v6 = vmul.f32 %v2895_v61, %v2895_v61  ;;  %v1131_v22 = vmul.f32 0.03125, %v1087_v49  ;;  %2195 = vrsqrt.f32 %v1210_v7  ;;  %1040 = vadd.xlane.f32.xlu1 %v1039_v55  ;;  %2115 = vmatmul.msk.f32.gmra.mxu2 %vm993_vm5, %v1417_v14  ;;  %vm1295_vm14 = vweird.f32 %v2194_v1 }
 0x265   :  { %v1290_v13 = vmul.f32 %v2194_v1, %v1289_v60  ;;  %v1287_v3 = vsel %vm1286_vm13, %v2192_v37, %v1283_v46  ;;  %v1103_v2 = vsel %vm993_vm5, %v1057_v4, 0.0  ;;  %vm1296_vm2 = vmor %vm1294_vm15, %vm1295_vm14  ;;  %vm1304_vm4 = vweird.f32 %v1210_v7 }
 0x266   :  { %v1163_v45 = vsub.f32 %v1131_v22, %v1147_v6  ;;  %v1384_v53 = vmul.f32 %v1287_v3, %v1192_v12  ;;  %1104 = vadd.xlane.f32.xlu2 %v1103_v2  ;;  %v1195_v63 = vsub.f32 %v2731_v9, %v2895_v61 }
 0x267   :  { %v1291_v20 = vmul.f32 0.5, %v1290_v13 }
 0x268   :  { %v1179_v62 = vmax.f32 %v1163_v45, 0.0  ;;  %v1401_v25 = vmul.f32 %v2780_v11, %v1384_v53 }
 0x269   :  { %v1292_v58 = vsub.f32 1.5, %v1291_v20 }
 0x26a   :  { %v1211_v15 = vadd.f32 1e-05, %v1179_v62  ;;  %v2196_v27 = vpop.eup %2195  ;;  %v1418_v40 = vadd.f32 %v2789_v28, %v1401_v25 }
 0x26b   :  { %v1293_v5 = vmul.f32 %v2194_v1, %v1292_v58  ;;  %v1299_v37 = vmul.f32 %v2196_v27, %v1210_v7  ;;  %vm1305_vm3 = vweird.f32 %v2196_v27 }
 0x26c   :  { %2197 = vrsqrt.f32 %v1211_v15  ;;  %2116 = vmatmul.msk.f32.gmra.mxu2 %vm993_vm5, %v1418_v40  ;;  %vm1306_vm6 = vmor %vm1304_vm4, %vm1305_vm3  ;;  %vm1314_vm8 = vweird.f32 %v1211_v15 }
 0x26d   :  { %v1297_v32 = vsel %vm1296_vm2, %v2194_v1, %v1293_v5  ;;  %v1300_v30 = vmul.f32 %v2196_v27, %v1299_v37 }
 0x26e   :  { %v1385_v38 = vmul.f32 %v1297_v32, %v1193_v8 }
 0x26f   :  { %v1301_v39 = vmul.f32 0.5, %v1300_v30 }
 0x270   :  { %v1402_v34 = vmul.f32 %v2780_v11, %v1385_v38 }
 0x271   :  { %v1302_v42 = vsub.f32 1.5, %v1301_v39 }
 0x272   :  { %v2198_v41 = vpop.eup %2197  ;;  %v1419_v19 = vadd.f32 %v2789_v28, %v1402_v34 }
 0x273   :  { %v1309_v24 = vmul.f32 %v2198_v41, %v1211_v15  ;;  %v1303_v10 = vmul.f32 %v2196_v27, %v1302_v42  ;;  %vm1315_vm7 = vweird.f32 %v2198_v41 }
 0x274   :  { %2117 = vmatmul.msk.f32.gmra.mxu2 %vm993_vm5, %v1419_v19  ;;  %vm1316_vm9 = vmor %vm1314_vm8, %vm1315_vm7 }
 0x275   :  { %v1310_v48 = vmul.f32 %v2198_v41, %v1309_v24  ;;  %v1307_v50 = vsel %vm1306_vm6, %v2196_v27, %v1303_v10 }
 0x276   :  { %v1386_v44 = vmul.f32 %v1307_v50, %v1194_v26 }
 0x277   :  { %v1311_v23 = vmul.f32 0.5, %v1310_v48 }
 0x278   :  { %v1403_v51 = vmul.f32 %v2780_v11, %v1386_v44 }
 0x279   :  { %v1312_v36 = vsub.f32 1.5, %v1311_v23 }
 0x27a   :  { %v1420_v43 = vadd.f32 %v2789_v28, %v1403_v51 }
 0x27b   :  { %v1313_v52 = vmul.f32 %v2198_v41, %v1312_v36 }
 0x27c   :  { %2118 = vmatmul.msk.f32.gmra.mxu2 %vm993_vm5, %v1420_v43 }
 0x27d   :  { %v1317_v47 = vsel %vm1316_vm9, %v2198_v41, %v1313_v52 }
 0x27e   :  { %v1387_v29 = vmul.f32 %v1317_v47, %v1195_v63 }
 0x280   :  { %v1404_v35 = vmul.f32 %v2780_v11, %v1387_v29 }
 0x282   :  { %v1421_v54 = vadd.f32 %v2789_v28, %v1404_v35 }
 0x284   :  { %2119 = vmatmul.msk.f32.gmra.mxu2 %vm993_vm5, %v1421_v54 }
 0x2a6   :  { %v1026_v33 = vpop.xlane.xlu0 %1025 }
 0x2a7   :  { %v1116_v57 = vmul.f32 0.03125, %v1026_v33 }
 0x2a8   :  { %v1090_v59 = vpop.xlane.xlu1 %1089 }
 0x2a9   :  { %v1148_v1 = vmul.f32 %v1116_v57, %v1116_v57  ;;  %v1132_v49 = vmul.f32 0.03125, %v1090_v59  ;;  %v1196_v5 = vsub.f32 %v2766_v56, %v1116_v57 }
 0x2ab   :  { %v1164_v17 = vsub.f32 %v1132_v49, %v1148_v1 }
 0x2ad   :  { %v1180_v46 = vmax.f32 %v1164_v17, 0.0 }
 0x2af   :  { %v1212_v60 = vadd.f32 1e-05, %v1180_v46  ;;  %v1029_v9 = vpop.xlane.xlu2 %1028 }
 0x2b0   :  { %v1117_v61 = vmul.f32 0.03125, %v1029_v9 }
 0x2b1   :  { %2199 = vrsqrt.f32 %v1212_v60  ;;  %v1093_v6 = vpop.xlane.xlu0 %1092  ;;  %vm1324_vm1 = vweird.f32 %v1212_v60 }
 0x2b2   :  { %v1149_v7 = vmul.f32 %v1117_v61, %v1117_v61  ;;  %v1133_v22 = vmul.f32 0.03125, %v1093_v6  ;;  %v1197_v23 = vsub.f32 %v2791_v16, %v1117_v61 }
 0x2b4   :  { %v1165_v13 = vsub.f32 %v1133_v22, %v1149_v7 }
 0x2b6   :  { %v1181_v45 = vmax.f32 %v1165_v13, 0.0 }
 0x2b7   :  { %v2200_v55 = vpop.eup %2199  ;;  %v1032_v4 = vpop.xlane.xlu1 %1031 }
 0x2b8   :  { %v1319_v12 = vmul.f32 %v2200_v55, %v1212_v60  ;;  %v2930_v3 = vmul.f32 0.03125, %v1032_v4  ;;  %v1213_v53 = vadd.f32 1e-05, %v1181_v45  ;;  %vm1325_vm0 = vweird.f32 %v2200_v55 }
 0x2b9   :  { %v1096_v2 = vpop.xlane.xlu2 %1095  ;;  %vm1326_vm10 = vmor %vm1324_vm1, %vm1325_vm0 }
 0x2ba   :  { %v1320_v14 = vmul.f32 %v2200_v55, %v1319_v12  ;;  %v1150_v62 = vmul.f32 %v2930_v3, %v2930_v3  ;;  %2201 = vrsqrt.f32 %v1213_v53  ;;  %v1134_v25 = vmul.f32 0.03125, %v1096_v2 }
 0x2bb   :  { %vm1334_vm12 = vweird.f32 %v1213_v53  ;;  %v1198_v17 = vsub.f32 %v2814_v0, %v2930_v3 }
 0x2bc   :  { %v1321_v20 = vmul.f32 0.5, %v1320_v14  ;;  %v1166_v27 = vsub.f32 %v1134_v25, %v1150_v62 }
 0x2be   :  { %v1322_v58 = vsub.f32 1.5, %v1321_v20  ;;  %v1182_v40 = vmax.f32 %v1166_v27, 0.0 }
 0x2c0   :  { %v1323_v15 = vmul.f32 %v2200_v55, %v1322_v58  ;;  %v2202_v32 = vpop.eup %2201  ;;  %v1214_v30 = vadd.f32 1e-05, %v1182_v40 }
 0x2c1   :  { %v1329_v38 = vmul.f32 %v2202_v32, %v1213_v53  ;;  %vm1335_vm11 = vweird.f32 %v2202_v32 }
 0x2c2   :  { %v1327_v8 = vsel %vm1326_vm10, %v2200_v55, %v1323_v15  ;;  %2203 = vrsqrt.f32 %v1214_v30  ;;  %vm1336_vm13 = vmor %vm1334_vm12, %vm1335_vm11  ;;  %vm1344_vm15 = vweird.f32 %v1214_v30 }
 0x2c3   :  { %v1388_v37 = vmul.f32 %v1327_v8, %v1196_v5  ;;  %v1330_v34 = vmul.f32 %v2202_v32, %v1329_v38 }
 0x2c5   :  { %v1405_v39 = vmul.f32 %v2780_v11, %v1388_v37  ;;  %v1331_v42 = vmul.f32 0.5, %v1330_v34 }
 0x2c7   :  { %v1422_v41 = vadd.f32 %v2789_v28, %v1405_v39  ;;  %v1332_v24 = vsub.f32 1.5, %v1331_v42  ;;  %v1035_v19 = vpop.xlane.xlu0 %1034 }
 0x2c8   :  { %v2204_v56 = vpop.eup %2203  ;;  %v2938_v10 = vmul.f32 0.03125, %v1035_v19 }
 0x2c9   :  { %2120 = vmatmul.msk.f32.gmra.mxu2 %vm993_vm5, %v1422_v41  ;;  %v1333_v26 = vmul.f32 %v2202_v32, %v1332_v24  ;;  %v1339_v48 = vmul.f32 %v2204_v56, %v1214_v30  ;;  %v1099_v50 = vpop.xlane.xlu1 %1098  ;;  %vm1345_vm14 = vweird.f32 %v2204_v56  ;;  %v2955_v24 = vpop.f32.mrf.mxu2 }
 0x2ca   :  { %v1151_v44 = vmul.f32 %v2938_v10, %v2938_v10  ;;  %v1135_v36 = vmul.f32 0.03125, %v1099_v50  ;;  %vm1346_vm2 = vmor %vm1344_vm15, %vm1345_vm14  ;;  %v1199_v40 = vsub.f32 %v2850_v31, %v2938_v10 }
 0x2cb   :  { %v1340_v51 = vmul.f32 %v2204_v56, %v1339_v48  ;;  %v1337_v52 = vsel %vm1336_vm13, %v2202_v32, %v1333_v26 }
 0x2cc   :  { %v1167_v43 = vsub.f32 %v1135_v36, %v1151_v44  ;;  %v1389_v63 = vmul.f32 %v1337_v52, %v1197_v23 }
 0x2cd   :  { %v1341_v47 = vmul.f32 0.5, %v1340_v51 }
 0x2ce   :  { %v1183_v29 = vmax.f32 %v1167_v43, 0.0  ;;  %v1406_v54 = vmul.f32 %v2780_v11, %v1389_v63 }
 0x2cf   :  { %v1038_v35 = vpop.xlane.xlu2 %1037  ;;  %v1342_v33 = vsub.f32 1.5, %v1341_v47 }
 0x2d0   :  { %v1120_v57 = vmul.f32 0.03125, %v1038_v35  ;;  %v1215_v59 = vadd.f32 1e-05, %v1183_v29  ;;  %v1423_v16 = vadd.f32 %v2789_v28, %v1406_v54 }
 0x2d1   :  { %v1343_v1 = vmul.f32 %v2204_v56, %v1342_v33  ;;  %v1102_v46 = vpop.xlane.xlu0 %1101  ;;  %v2961_v52 = vpop.f32.mrf.mxu2 }
 0x2d2   :  { %v1152_v49 = vmul.f32 %v1120_v57, %v1120_v57  ;;  %2205 = vrsqrt.f32 %v1215_v59  ;;  %2121 = vmatmul.msk.f32.gmra.mxu2 %vm993_vm5, %v1423_v16  ;;  %v1136_v60 = vmul.f32 0.03125, %v1102_v46  ;;  %vm1354_vm4 = vweird.f32 %v1215_v59 }
 0x2d3   :  { %v1347_v9 = vsel %vm1346_vm2, %v2204_v56, %v1343_v1  ;;  %v1200_v31 = vsub.f32 %v2871_v18, %v1120_v57 }
 0x2d4   :  { %v1390_v61 = vmul.f32 %v1347_v9, %v1198_v17  ;;  %v1168_v7 = vsub.f32 %v1136_v60, %v1152_v49 }
 0x2d6   :  { %v1407_v22 = vmul.f32 %v2780_v11, %v1390_v61  ;;  %v1184_v55 = vmax.f32 %v1168_v7, 0.0 }
 0x2d7   :  { %v1041_v6 = vpop.xlane.xlu1 %1040 }
 0x2d8   :  { %v1121_v12 = vmul.f32 0.03125, %v1041_v6  ;;  %v2206_v13 = vpop.eup %2205  ;;  %v1424_v14 = vadd.f32 %v2789_v28, %v1407_v22  ;;  %v1216_v4 = vadd.f32 1e-05, %v1184_v55 }
 0x2d9   :  { %v1349_v45 = vmul.f32 %v2206_v13, %v1215_v59  ;;  %v1105_v3 = vpop.xlane.xlu2 %1104  ;;  %vm1355_vm3 = vweird.f32 %v2206_v13  ;;  %v2968_v35 = vpop.f32.mrf.mxu2 }
 0x2da   :  { %v1153_v0 = vmul.f32 %v1121_v12, %v1121_v12  ;;  %2122 = vmatmul.msk.f32.gmra.mxu2 %vm993_vm5, %v1424_v14  ;;  %2207 = vrsqrt.f32 %v1216_v4  ;;  %v1137_v53 = vmul.f32 0.03125, %v1105_v3  ;;  %vm1356_vm6 = vmor %vm1354_vm4, %vm1355_vm3  ;;  %vm1364_vm8 = vweird.f32 %v1216_v4 }
 0x2db   :  { %v1350_v20 = vmul.f32 %v2206_v13, %v1349_v45  ;;  %v1201_v43 = vsub.f32 %v2893_v21, %v1121_v12 }
 0x2dc   :  { %v1169_v2 = vsub.f32 %v1137_v53, %v1153_v0 }
 0x2dd   :  { %v1351_v62 = vmul.f32 0.5, %v1350_v20 }
 0x2de   :  { %v1185_v25 = vmax.f32 %v1169_v2, 0.0 }
 0x2df   :  { %v1352_v58 = vsub.f32 1.5, %v1351_v62 }
 0x2e0   :  { %v2208_v15 = vpop.eup %2207  ;;  %v1217_v5 = vadd.f32 1e-05, %v1185_v25 }
 0x2e1   :  { %v1353_v27 = vmul.f32 %v2206_v13, %v1352_v58  ;;  %v1359_v8 = vmul.f32 %v2208_v15, %v1216_v4  ;;  %vm1365_vm7 = vweird.f32 %v2208_v15  ;;  %v2970_v54 = vpop.f32.mrf.mxu2 }
 0x2e2   :  { %2209 = vrsqrt.f32 %v1217_v5  ;;  %vm1366_vm9 = vmor %vm1364_vm8, %vm1365_vm7  ;;  %vm1374_vm1 = vweird.f32 %v1217_v5 }
 0x2e3   :  { %v1357_v37 = vsel %vm1356_vm6, %v2206_v13, %v1353_v27  ;;  %v1360_v32 = vmul.f32 %v2208_v15, %v1359_v8 }
 0x2e4   :  { %v1391_v30 = vmul.f32 %v1357_v37, %v1199_v40 }
 0x2e5   :  { %v1361_v38 = vmul.f32 0.5, %v1360_v32 }
 0x2e6   :  { %v1408_v39 = vmul.f32 %v2780_v11, %v1391_v30 }
 0x2e7   :  { %v1362_v34 = vsub.f32 1.5, %v1361_v38 }
 0x2e8   :  { %v1425_v41 = vadd.f32 %v2789_v28, %v1408_v39  ;;  %v2210_v42 = vpop.eup %2209 }
 0x2e9   :  { %v1363_v19 = vmul.f32 %v2208_v15, %v1362_v34  ;;  %v1369_v56 = vmul.f32 %v2210_v42, %v1217_v5  ;;  %vm1375_vm0 = vweird.f32 %v2210_v42  ;;  %v2972_v33 = vpop.f32.mrf.mxu2 }
 0x2ea   :  { %2123 = vmatmul.msk.f32.gmra.mxu2 %vm993_vm5, %v1425_v41  ;;  %vm1376_vm10 = vmor %vm1374_vm1, %vm1375_vm0 }
 0x2eb   :  { %v1370_v10 = vmul.f32 %v2210_v42, %v1369_v56  ;;  %v1367_v26 = vsel %vm1366_vm9, %v2208_v15, %v1363_v19 }
 0x2ec   :  { %v1392_v48 = vmul.f32 %v1367_v26, %v1200_v31 }
 0x2ed   :  { %v1371_v50 = vmul.f32 0.5, %v1370_v10 }
 0x2ee   :  { %v1409_v23 = vmul.f32 %v2780_v11, %v1392_v48 }
 0x2ef   :  { %v1372_v44 = vsub.f32 1.5, %v1371_v50 }
 0x2f0   :  { %v1426_v36 = vadd.f32 %v2789_v28, %v1409_v23 }
 0x2f1   :  { %v1373_v51 = vmul.f32 %v2210_v42, %v1372_v44  ;;  %v2974_v57 = vpop.f32.mrf.mxu2 }
 0x2f2   :  { %2124 = vmatmul.msk.f32.gmra.mxu2 %vm993_vm5, %v1426_v36 }
 0x2f3   :  { %v1377_v18 = vsel %vm1376_vm10, %v2210_v42, %v1373_v51 }
 0x2f4   :  { %v1393_v63 = vmul.f32 %v1377_v18, %v1201_v43 }
 0x2f6   :  { %v1410_v47 = vmul.f32 %v2780_v11, %v1393_v63  ;;  %v2981_v11 = vld [vmem:[%s3503_s7] sm:$0xff] }
 0x2f8   :  { %v1427_v29 = vadd.f32 %v2789_v28, %v1410_v47  ;;  %v2984_v28 = vperm.slane %v2981_v11, 3 }
 0x2f9   :  { %v2976_v21 = vpop.f32.mrf.mxu2 }
 0x2fa   :  { %2125 = vmatmul.msk.f32.gmra.mxu2 %vm993_vm5, %v1427_v29  ;;  %v1514_v36 = vadd.f32 %v2974_v57, %v2984_v28  ;;  %v1511_v63 = vadd.f32 %v2972_v33, %v2984_v28  ;;  %v1517_v29 = vadd.f32 %v2976_v21, %v2984_v28 }
 0x2fc   :  { %v3057_v47 = vmax.f32 %v1514_v36, 0.0 }
 0x301   :  { %v1519_v59 = vpop.f32.mrf.mxu2 }
 0x302   :  { %v1520_v41 = vadd.f32 %v1519_v59, %v2984_v28  ;;  %v3063_v59 = vmax.f32 %v1511_v63, 0.0 }
 0x304   :  { %v3036_v31 = vmax.f32 %v1520_v41, 0.0  ;;  %v1614_v21 = vmul.f32 %v3063_v59, %v3063_v59 }
 0x306   :  { %v1617_v23 = vmul.f32 %v3036_v31, %v3036_v31 }
 0x308   :  { %v1647_v51 = vsel %vm993_vm5, %v1617_v23, 0.0 }
 0x309   :  { %v1522_v16 = vpop.f32.mrf.mxu2 }
 0x30a   :  { %v1523_v30 = vadd.f32 %v1522_v16, %v2984_v28  ;;  %v1577_v16 = vsel %vm993_vm5, %v3057_v47, 0.0 }
 0x30c   :  { %v3031_v42 = vmax.f32 %v1523_v30, 0.0 }
 0x30e   :  { %v1586_v10 = vsel %vm993_vm5, %v3031_v42, 0.0  ;;  %v1618_v57 = vmul.f32 %v3031_v42, %v3031_v42 }
 0x310   :  { %v1650_v33 = vsel %vm993_vm5, %v1618_v57, 0.0 }
 0x311   :  { %v1525_v1 = vpop.f32.mrf.mxu2 }
 0x312   :  { %v1526_v19 = vadd.f32 %v1525_v1, %v2984_v28  ;;  %v3067_v1 = vmax.f32 %v1517_v29, 0.0 }
 0x314   :  { %v3040_v26 = vmax.f32 %v1526_v19, 0.0 }
 0x316   :  { %v1619_v44 = vmul.f32 %v3040_v26, %v3040_v26  ;;  %v1589_v18 = vsel %vm993_vm5, %v3040_v26, 0.0 }
 0x318   :  { %v1653_v43 = vsel %vm993_vm5, %v1619_v44, 0.0 }
 0x34c   :  { %v1528_v49 = vpop.f32.mrf.mxu2 }
 0x34d   :  { %v1529_v62 = vadd.f32 %v1528_v49, %v2984_v28  ;;  %v1583_v49 = vsel %vm993_vm5, %v3036_v31, 0.0 }
 0x34f   :  { %v3013_v25 = vmax.f32 %v1529_v62, 0.0 }
 0x351   :  { %v1620_v8 = vmul.f32 %v3013_v25, %v3013_v25  ;;  %v1592_v48 = vsel %vm993_vm5, %v3013_v25, 0.0 }
 0x353   :  { %v1656_v38 = vsel %vm993_vm5, %v1620_v8, 0.0 }
 0x355   :  { %v1531_v17 = vpop.f32.mrf.mxu2 }
 0x356   :  { %v1532_v46 = vadd.f32 %v1531_v17, %v2984_v28  ;;  %v1616_v17 = vmul.f32 %v3067_v1, %v3067_v1 }
 0x358   :  { %v2987_v60 = vmax.f32 %v1532_v46, 0.0  ;;  %v1505_v46 = vadd.f32 %v2968_v35, %v2984_v28  ;;  %v1615_v35 = vmul.f32 %v3057_v47, %v3057_v47 }
 0x35a   :  { %v1595_v9 = vsel %vm993_vm5, %v2987_v60, 0.0  ;;  %v1621_v56 = vmul.f32 %v2987_v60, %v2987_v60 }
 0x35b   :  { %1596 = vadd.xlane.f32.xlu2 %v1595_v9  ;;  %v1638_v9 = vsel %vm993_vm5, %v1614_v21, 0.0 }
 0x35c   :  { %v1659_v50 = vsel %vm993_vm5, %v1621_v56, 0.0 }
 0x35d   :  { %v1534_v61 = vpop.f32.mrf.mxu2 }
 0x35e   :  { %v1535_v7 = vadd.f32 %v1534_v61, %v2984_v28  ;;  %v1644_v61 = vsel %vm993_vm5, %v1616_v17, 0.0 }
 0x360   :  { %v2992_v6 = vmax.f32 %v1535_v7, 0.0  ;;  %v1580_v7 = vsel %vm993_vm5, %v3067_v1, 0.0 }
 0x362   :  { %v1598_v22 = vsel %vm993_vm5, %v2992_v6, 0.0  ;;  %v1622_v55 = vmul.f32 %v2992_v6, %v2992_v6 }
 0x363   :  { %1599 = vadd.xlane.f32.xlu0 %v1598_v22  ;;  %v1502_v22 = vadd.f32 %v2961_v52, %v2984_v28  ;;  %v1641_v52 = vsel %vm993_vm5, %v1615_v35, 0.0 }
 0x364   :  { %v1662_v12 = vsel %vm993_vm5, %v1622_v55, 0.0  ;;  %v3084_v55 = vmax.f32 %v1505_v46, 0.0 }
 0x365   :  { %1663 = vadd.xlane.f32.xlu1 %v1662_v12  ;;  %v1508_v12 = vadd.f32 %v2970_v54, %v2984_v28 }
 0x36d   :  { %v1537_v13 = vpop.f32.mrf.mxu2 }
 0x36e   :  { %v1538_v14 = vadd.f32 %v1537_v13, %v2984_v28  ;;  %v3090_v13 = vmax.f32 %v1502_v22, 0.0 }
 0x370   :  { %v3000_v45 = vmax.f32 %v1538_v14, 0.0  ;;  %v1568_v14 = vsel %vm993_vm5, %v3084_v55, 0.0  ;;  %v1611_v54 = vmul.f32 %v3090_v13, %v3090_v13 }
 0x372   :  { %v1601_v4 = vsel %vm993_vm5, %v3000_v45, 0.0  ;;  %v1623_v0 = vmul.f32 %v3000_v45, %v3000_v45 }
 0x373   :  { %1602 = vadd.xlane.f32.xlu1 %v1601_v4  ;;  %v3094_v4 = vmax.f32 %v1508_v12, 0.0 }
 0x374   :  { %v1665_v3 = vsel %vm993_vm5, %v1623_v0, 0.0  ;;  %v1574_v0 = vsel %vm993_vm5, %v3063_v59, 0.0 }
 0x375   :  { %1666 = vadd.xlane.f32.xlu2 %v1665_v3  ;;  %v1540_v20 = vpop.f32.mrf.mxu2  ;;  %v1613_v3 = vmul.f32 %v3094_v4, %v3094_v4  ;;  %v1571_v62 = vsel %vm993_vm5, %v3094_v4, 0.0 }
 0x376   :  { %v1541_v53 = vadd.f32 %v1540_v20, %v2984_v28  ;;  %v1629_v20 = vsel %vm993_vm5, %v1611_v54, 0.0 }
 0x378   :  { %v3009_v2 = vmax.f32 %v1541_v53, 0.0  ;;  %v1635_v53 = vsel %vm993_vm5, %v1613_v3, 0.0 }
 0x37a   :  { %v1624_v58 = vmul.f32 %v3009_v2, %v3009_v2  ;;  %v1604_v15 = vsel %vm993_vm5, %v3009_v2, 0.0 }
 0x37c   :  { %v1668_v27 = vsel %vm993_vm5, %v1624_v58, 0.0  ;;  %v1499_v58 = vadd.f32 %v2955_v24, %v2984_v28 }
 0x37d   :  { %1605 = vadd.xlane.f32.xlu2 %v1604_v15  ;;  %v1543_v5 = vpop.f32.mrf.mxu2  ;;  %1669 = vadd.xlane.f32.xlu0 %v1668_v27  ;;  %v1612_v15 = vmul.f32 %v3084_v55, %v3084_v55 }
 0x37e   :  { %v1544_v40 = vadd.f32 %v1543_v5, %v2984_v28  ;;  %v3111_v27 = vmax.f32 %v1499_v58, 0.0  ;;  %v1565_v5 = vsel %vm993_vm5, %v3090_v13, 0.0 }
 0x380   :  { %v3021_v37 = vmax.f32 %v1544_v40, 0.0  ;;  %v1632_v40 = vsel %vm993_vm5, %v1612_v15, 0.0  ;;  %v1610_v8 = vmul.f32 %v3111_v27, %v3111_v27  ;;  %v1562_v24 = vsel %vm993_vm5, %v3111_v27, 0.0 }
 0x382   :  { %v1625_v32 = vmul.f32 %v3021_v37, %v3021_v37  ;;  %v1607_v34 = vsel %vm993_vm5, %v3021_v37, 0.0 }
 0x384   :  { %v1671_v39 = vsel %vm993_vm5, %v1625_v32, 0.0  ;;  %v1626_v32 = vsel %vm993_vm5, %v1610_v8, 0.0 }
 0x385   :  { %1657 = vadd.xlane.f32.xlu2 %v1656_v38  ;;  %1672 = vadd.xlane.f32.xlu1 %v1671_v39 }
 0x386   :  { %1608 = vadd.xlane.f32.xlu0 %v1607_v34 }
 0x38d   :  { %1587 = vadd.xlane.f32.xlu2 %v1586_v10  ;;  %1593 = vadd.xlane.f32.xlu1 %v1592_v48 }
 0x38e   :  { %1660 = vadd.xlane.f32.xlu0 %v1659_v50 }
 0x395   :  { %1648 = vadd.xlane.f32.xlu2 %v1647_v51  ;;  %1654 = vadd.xlane.f32.xlu1 %v1653_v43 }
 0x396   :  { %1590 = vadd.xlane.f32.xlu0 %v1589_v18 }
 0x39d   :  { %1578 = vadd.xlane.f32.xlu2 %v1577_v16  ;;  %1584 = vadd.xlane.f32.xlu1 %v1583_v49 }
 0x39e   :  { %1651 = vadd.xlane.f32.xlu0 %v1650_v33 }
 0x3a5   :  { %1639 = vadd.xlane.f32.xlu2 %v1638_v9  ;;  %1645 = vadd.xlane.f32.xlu1 %v1644_v61 }
 0x3a6   :  { %1581 = vadd.xlane.f32.xlu0 %v1580_v7 }
 0x3ad   :  { %1569 = vadd.xlane.f32.xlu2 %v1568_v14  ;;  %1575 = vadd.xlane.f32.xlu1 %v1574_v0 }
 0x3ae   :  { %1642 = vadd.xlane.f32.xlu0 %v1641_v52 }
 0x3b5   :  { %1630 = vadd.xlane.f32.xlu2 %v1629_v20  ;;  %1636 = vadd.xlane.f32.xlu1 %v1635_v53 }
 0x3b6   :  { %1572 = vadd.xlane.f32.xlu0 %v1571_v62 }
 0x3bd   :  { %1566 = vadd.xlane.f32.xlu1 %v1565_v5 }
 0x3be   :  { %1633 = vadd.xlane.f32.xlu0 %v1632_v40 }
 0x3c5   :  { %1627 = vadd.xlane.f32.xlu1 %v1626_v32 }
 0x3c6   :  { %1563 = vadd.xlane.f32.xlu0 %v1562_v24 }
 0x3ce   :  { %v1597_v38 = vpop.xlane.xlu2 %1596 }
 0x3cf   :  { %v3150_v52 = vmul.f32 0.03125, %v1597_v38 }
 0x3d1   :  { %v1717_v32 = vmul.f32 %v3150_v52, %v3150_v52 }
 0x3d6   :  { %v1600_v30 = vpop.xlane.xlu0 %1599 }
 0x3d7   :  { %v3121_v39 = vmul.f32 0.03125, %v1600_v30 }
 0x3d8   :  { %v1664_v28 = vpop.xlane.xlu1 %1663 }
 0x3d9   :  { %v1718_v34 = vmul.f32 %v3121_v39, %v3121_v39  ;;  %v1702_v41 = vmul.f32 0.03125, %v1664_v28 }
 0x3db   :  { %v1734_v23 = vsub.f32 %v1702_v41, %v1718_v34 }
 0x3dd   :  { %v1750_v36 = vmax.f32 %v1734_v23, 0.0 }
 0x3df   :  { %v3131_v29 = vadd.f32 1e-05, %v1750_v36 }
 0x3e1   :  { %2211 = vrsqrt.f32 %v3131_v29  ;;  %vm1912_vm11 = vweird.f32 %v3131_v29 }
 0x3e6   :  { %v1603_v19 = vpop.xlane.xlu1 %1602 }
 0x3e7   :  { %v3125_v56 = vmul.f32 0.03125, %v1603_v19  ;;  %v3144_v22 = vpop.eup %2211 }
 0x3e8   :  { %v1667_v10 = vpop.xlane.xlu2 %1666  ;;  %v1907_v54 = vmul.f32 %v3144_v22, %v3131_v29  ;;  %vm1913_vm12 = vweird.f32 %v3144_v22 }
 0x3e9   :  { %v1719_v48 = vmul.f32 %v3125_v56, %v3125_v56  ;;  %v1703_v50 = vmul.f32 0.03125, %v1667_v10  ;;  %vm3235_vm8 = vmor %vm1912_vm11, %vm1913_vm12 }
 0x3ea   :  { %v1908_v24 = vmul.f32 %v3144_v22, %v1907_v54 }
 0x3eb   :  { %v1735_v44 = vsub.f32 %v1703_v50, %v1719_v48 }
 0x3ec   :  { %v1909_v48 = vmul.f32 0.5, %v1908_v24 }
 0x3ed   :  { %v1751_v43 = vmax.f32 %v1735_v44, 0.0 }
 0x3ef   :  { %v3135_v49 = vadd.f32 1e-05, %v1751_v43 }
 0x3f0   :  { %v1606_v51 = vpop.xlane.xlu2 %1605  ;;  %v1670_v63 = vpop.xlane.xlu0 %1669 }
 0x3f1   :  { %v3129_v18 = vmul.f32 0.03125, %v1606_v51  ;;  %v1704_v16 = vmul.f32 0.03125, %v1670_v63  ;;  %2213 = vrsqrt.f32 %v3135_v49  ;;  %vm1922_vm13 = vweird.f32 %v3135_v49 }
 0x3f3   :  { %v1720_v57 = vmul.f32 %v3129_v18, %v3129_v18 }
 0x3f5   :  { %v1736_v33 = vsub.f32 %v1704_v16, %v1720_v57 }
 0x3f7   :  { %v1752_v21 = vmax.f32 %v1736_v33, 0.0  ;;  %v3148_v0 = vpop.eup %2213 }
 0x3f8   :  { %v1658_v17 = vpop.xlane.xlu2 %1657  ;;  %v1673_v9 = vpop.xlane.xlu1 %1672  ;;  %v1917_v15 = vmul.f32 %v3148_v0, %v3135_v49  ;;  %vm1923_vm14 = vweird.f32 %v3148_v0  ;;  %v1767_v49 = vsub.f32 %v3000_v45, %v3125_v56 }
 0x3f9   :  { %v3139_v46 = vadd.f32 1e-05, %v1752_v21  ;;  %v1609_v61 = vpop.xlane.xlu0 %1608  ;;  %v1705_v12 = vmul.f32 0.03125, %v1673_v9  ;;  %v1700_v38 = vmul.f32 0.03125, %v1658_v17  ;;  %v1910_v17 = vsub.f32 1.5, %v1909_v48  ;;  %vm3248_vm9 = vmor %vm1922_vm13, %vm1923_vm14 }
 0x3fa   :  { %v3141_v7 = vmul.f32 0.03125, %v1609_v61  ;;  %v1918_v19 = vmul.f32 %v3148_v0, %v1917_v15 }
 0x3fb   :  { %2215 = vrsqrt.f32 %v3139_v46  ;;  %v1911_v15 = vmul.f32 %v3144_v22, %v1910_v17  ;;  %vm1932_vm15 = vweird.f32 %v3139_v46 }
 0x3fc   :  { %v1721_v35 = vmul.f32 %v3141_v7, %v3141_v7  ;;  %v1919_v16 = vmul.f32 0.5, %v1918_v19 }
 0x3fe   :  { %v1737_v14 = vsub.f32 %v1705_v12, %v1721_v35 }
 0x400   :  { %v1753_v3 = vmax.f32 %v1737_v14, 0.0  ;;  %v1588_v20 = vpop.xlane.xlu2 %1587  ;;  %v1594_v62 = vpop.xlane.xlu1 %1593  ;;  %v1766_v14 = vsub.f32 %v2992_v6, %v3121_v39 }
 0x401   :  { %v3154_v53 = vpop.eup %2215  ;;  %v1661_v58 = vpop.xlane.xlu0 %1660  ;;  %v3162_v8 = vmul.f32 0.03125, %v1594_v62  ;;  %v1920_v62 = vsub.f32 1.5, %v1919_v16 }
 0x402   :  { %v1927_v5 = vmul.f32 %v3154_v53, %v3139_v46  ;;  %v3160_v40 = vadd.f32 1e-05, %v1753_v3  ;;  %v1701_v28 = vmul.f32 0.03125, %v1661_v58  ;;  %v3186_v3 = vperm.slane %v2981_v11, 4 }
 0x403   :  { %v1716_v34 = vmul.f32 %v3162_v8, %v3162_v8  ;;  %vm1933_vm2 = vweird.f32 %v3154_v53 }
 0x404   :  { %v1928_v30 = vmul.f32 %v3154_v53, %v1927_v5  ;;  %2217 = vrsqrt.f32 %v3160_v40  ;;  %v1733_v41 = vsub.f32 %v1701_v28, %v1717_v32  ;;  %vm3217_vm4 = vmor %vm1932_vm15, %vm1933_vm2  ;;  %vm1942_vm6 = vweird.f32 %v3160_v40 }
 0x405   :  { %v1732_v10 = vsub.f32 %v1700_v38, %v1716_v34  ;;  %v1769_v38 = vsub.f32 %v3021_v37, %v3141_v7 }
 0x406   :  { %v1749_v50 = vmax.f32 %v1733_v41, 0.0  ;;  %v1929_v23 = vmul.f32 0.5, %v1928_v30  ;;  %v3202_v41 = vmul.f32 0.03125, %v1588_v20 }
 0x407   :  { %v1748_v44 = vmax.f32 %v1732_v10, 0.0 }
 0x408   :  { %v1649_v36 = vpop.xlane.xlu2 %1648  ;;  %v3172_v51 = vadd.f32 1e-05, %v1749_v50  ;;  %v1655_v43 = vpop.xlane.xlu1 %1654  ;;  %v1930_v61 = vsub.f32 1.5, %v1929_v23  ;;  %v1921_v50 = vmul.f32 %v3148_v0, %v1920_v62 }
 0x409   :  { %v1591_v63 = vpop.xlane.xlu0 %1590  ;;  %v3174_v33 = vadd.f32 1e-05, %v1748_v44  ;;  %v1699_v12 = vmul.f32 0.03125, %v1655_v43 }
 0x40a   :  { %v2218_v57 = vpop.eup %2217  ;;  %v3176_v21 = vmul.f32 0.03125, %v1591_v63  ;;  %2219 = vrsqrt.f32 %v3172_v51  ;;  %v1931_v32 = vmul.f32 %v3154_v53, %v1930_v61  ;;  %v1697_v63 = vmul.f32 0.03125, %v1649_v36 }
 0x40b   :  { %v1937_v9 = vmul.f32 %v2218_v57, %v3160_v40  ;;  %2221 = vrsqrt.f32 %v3174_v33  ;;  %vm1943_vm3 = vweird.f32 %v2218_v57  ;;  %v1768_v36 = vsub.f32 %v3009_v2, %v3129_v18 }
 0x40c   :  { %v1715_v35 = vmul.f32 %v3176_v21, %v3176_v21  ;;  %vm1944_vm7 = vmor %vm1942_vm6, %vm1943_vm3  ;;  %v1935_v46 = vsel %vm3217_vm4, %v3154_v53, %v1931_v32  ;;  %v1925_v18 = vsel %vm3248_vm9, %v3148_v0, %v1921_v50  ;;  %vm1902_vm1 = vweird.f32 %v3172_v51 }
 0x40d   :  { %v1938_v54 = vmul.f32 %v2218_v57, %v1937_v9  ;;  %v1960_v2 = vmul.f32 %v1935_v46, %v1768_v36  ;;  %v1959_v37 = vmul.f32 %v1925_v18, %v1767_v49  ;;  %vm1892_vm11 = vweird.f32 %v3174_v33 }
 0x40e   :  { %v1731_v58 = vsub.f32 %v1699_v12, %v1715_v35  ;;  %v1714_v12 = vmul.f32 %v3202_v41, %v3202_v41 }
 0x40f   :  { %v1939_v5 = vmul.f32 0.5, %v1938_v54  ;;  %v1976_v46 = vmul.f32 %v3186_v3, %v1959_v37 }
 0x410   :  { %v1747_v24 = vmax.f32 %v1731_v58, 0.0  ;;  %v3196_v28 = vpop.xlane.xlu2 %1578  ;;  %v3198_v30 = vpop.eup %2219 }
 0x411   :  { %v1940_v34 = vsub.f32 1.5, %v1939_v5  ;;  %v1585_v19 = vpop.xlane.xlu1 %1584  ;;  %v1652_v10 = vpop.xlane.xlu0 %1651  ;;  %v1897_v23 = vmul.f32 %v3198_v30, %v3172_v51  ;;  %vm1903_vm0 = vweird.f32 %v3198_v30 }
 0x412   :  { %v3204_v48 = vpop.eup %2221  ;;  %v3209_v44 = vadd.f32 1e-05, %v1747_v24  ;;  %v3211_v43 = vmul.f32 0.03125, %v1585_v19  ;;  %v1698_v62 = vmul.f32 0.03125, %v1652_v10  ;;  %v3262_v10 = vperm.slane %v2981_v11, 5  ;;  %vm3296_vm12 = vmor %vm1902_vm1, %vm1903_vm0 }
 0x413   :  { %v1941_v7 = vmul.f32 %v2218_v57, %v1940_v34  ;;  %v1887_v20 = vmul.f32 %v3204_v48, %v3174_v33  ;;  %v1898_v16 = vmul.f32 %v3198_v30, %v1897_v23  ;;  %vm1893_vm10 = vweird.f32 %v3204_v48 }
 0x414   :  { %2223 = vrsqrt.f32 %v3209_v44  ;;  %v1713_v17 = vmul.f32 %v3211_v43, %v3211_v43  ;;  %v1730_v32 = vsub.f32 %v1698_v62, %v1714_v12  ;;  %v1764_v33 = vsub.f32 %v3013_v25, %v3162_v8  ;;  %vm3314_vm13 = vmor %vm1892_vm11, %vm1893_vm10 }
 0x415   :  { %v1945_v9 = vsel %vm1944_vm7, %v2218_v57, %v1941_v7  ;;  %v1888_v61 = vmul.f32 %v3204_v48, %v1887_v20  ;;  %v1899_v35 = vmul.f32 0.5, %v1898_v16  ;;  %v1915_v57 = vsel %vm3235_vm8, %v3144_v22, %v1911_v15 }
 0x416   :  { %v1961_v29 = vmul.f32 %v1945_v9, %v1769_v38  ;;  %v1729_v54 = vsub.f32 %v1697_v63, %v1713_v17  ;;  %v1746_v50 = vmax.f32 %v1730_v32, 0.0  ;;  %v1958_v45 = vmul.f32 %v1915_v57, %v1766_v14 }
 0x417   :  { %v1889_v58 = vmul.f32 0.5, %v1888_v61  ;;  %v1900_v38 = vsub.f32 1.5, %v1899_v35  ;;  %v1977_v20 = vmul.f32 %v3186_v3, %v1960_v2  ;;  %v1765_v61 = vsub.f32 %v2987_v60, %v3150_v52 }
 0x418   :  { %v1745_v5 = vmax.f32 %v1729_v54, 0.0  ;;  %v1978_v24 = vmul.f32 %v3186_v3, %v1961_v29  ;;  %v1640_v15 = vpop.xlane.xlu2 %1639  ;;  %v3278_v63 = vadd.f32 1e-05, %v1746_v50  ;;  %v1975_v53 = vmul.f32 %v3186_v3, %v1958_v45 }
 0x419   :  { %v1646_v34 = vpop.xlane.xlu1 %1645  ;;  %v1582_v19 = vpop.xlane.xlu0 %1581  ;;  %v1890_v56 = vsub.f32 1.5, %v1889_v58  ;;  %v1901_v6 = vmul.f32 %v3198_v30, %v1900_v38  ;;  %v1994_v12 = vadd.f32 %v3262_v10, %v1977_v20  ;;  %v3303_v35 = vmul.f32 0.03125, %v3196_v28 }
 0x41a   :  { %v3264_v23 = vpop.eup %2223  ;;  %v3266_v0 = vadd.f32 1e-05, %v1745_v5  ;;  %v3273_v7 = vmul.f32 0.03125, %v1582_v19  ;;  %v1995_v16 = vadd.f32 %v3262_v10, %v1978_v24  ;;  %v1696_v14 = vmul.f32 0.03125, %v1646_v34 }
 0x41b   :  { %v1877_v22 = vmul.f32 %v3264_v23, %v3209_v44  ;;  %v1891_v40 = vmul.f32 %v3204_v48, %v1890_v56  ;;  %v1905_v60 = vsel %vm3296_vm12, %v3198_v30, %v1901_v6  ;;  %v1694_v28 = vmul.f32 0.03125, %v1640_v15 }
 0x41c   :  { %2225 = vrsqrt.f32 %v3266_v0  ;;  %v1712_v17 = vmul.f32 %v3273_v7, %v3273_v7  ;;  %2126 = vmatpush.xpose.msk.msra.mxu3 %vm993_vm5, %v1995_v16  ;;  %v1993_v57 = vadd.f32 %v3262_v10, %v1976_v46  ;;  %vm1883_vm14 = vweird.f32 %v3264_v23 }
 0x41d   :  { %v1878_v39 = vmul.f32 %v3264_v23, %v1877_v22  ;;  %2227 = vrsqrt.f32 %v3278_v63  ;;  %v1895_v30 = vsel %vm3314_vm13, %v3204_v48, %v1891_v40  ;;  %v1957_v38 = vmul.f32 %v1905_v60, %v1765_v61 }
 0x41e   :  { %v1728_v9 = vsub.f32 %v1696_v14, %v1712_v17  ;;  %v1711_v48 = vmul.f32 %v3303_v35, %v3303_v35  ;;  %v1956_v37 = vmul.f32 %v1895_v30, %v1764_v33  ;;  %vm1882_vm15 = vweird.f32 %v3209_v44 }
 0x41f   :  { %v1879_v36 = vmul.f32 0.5, %v1878_v39  ;;  %vm3340_vm2 = vmor %vm1882_vm15, %vm1883_vm14  ;;  %v1992_v16 = vadd.f32 %v3262_v10, %v1975_v53  ;;  %v1763_v6 = vsub.f32 %v3040_v26, %v3176_v21  ;;  %v1974_v14 = vmul.f32 %v3186_v3, %v1957_v38 }
 0x420   :  { %v1744_v54 = vmax.f32 %v1728_v9, 0.0  ;;  %2127 = vmatpush.xpose.msk.msra.mxu3 %vm993_vm5, %v1994_v12  ;;  %v1570_v50 = vpop.xlane.xlu2 %1569  ;;  %vm1872_vm3 = vweird.f32 %v3278_v63  ;;  %v1973_v21 = vmul.f32 %v3186_v3, %v1956_v37  ;;  %vm1862_vm8 = vweird.f32 %v3266_v0 }
 0x421   :  { %v1880_v29 = vsub.f32 1.5, %v1879_v36  ;;  %v1576_v62 = vpop.xlane.xlu1 %1575  ;;  %v1643_v58 = vpop.xlane.xlu0 %1642  ;;  %v3354_v51 = vmul.f32 0.03125, %v1570_v50  ;;  %v1761_v38 = vsub.f32 %v3036_v31, %v3211_v43 }
 0x422   :  { %v3308_v52 = vpop.eup %2225  ;;  %v3319_v18 = vmul.f32 0.03125, %v1576_v62  ;;  %v3327_v8 = vadd.f32 1e-05, %v1744_v54  ;;  %v1695_v49 = vmul.f32 0.03125, %v1643_v58  ;;  %v1991_v58 = vadd.f32 %v3262_v10, %v1974_v14 }
 0x423   :  { %v1857_v25 = vmul.f32 %v3308_v52, %v3266_v0  ;;  %v2228_v5 = vpop.eup %2227  ;;  %v1881_v32 = vmul.f32 %v3264_v23, %v1880_v29  ;;  %vm1863_vm6 = vweird.f32 %v3308_v52 }
 0x424   :  { %v1710_v24 = vmul.f32 %v3319_v18, %v3319_v18  ;;  %v1867_v19 = vmul.f32 %v2228_v5, %v3278_v63  ;;  %2229 = vrsqrt.f32 %v3327_v8  ;;  %2128 = vmatpush.xpose.msk.msra.mxu3 %vm993_vm5, %v1993_v57  ;;  %v1727_v20 = vsub.f32 %v1695_v49, %v1711_v48  ;;  %vm3381_vm9 = vmor %vm1862_vm8, %vm1863_vm6 }
 0x425   :  { %v1858_v34 = vmul.f32 %v3308_v52, %v1857_v25  ;;  %v1885_v44 = vsel %vm3340_vm2, %v3264_v23, %v1881_v32  ;;  %vm1873_vm4 = vweird.f32 %v2228_v5  ;;  %v1708_v48 = vmul.f32 %v3354_v51, %v3354_v51 }
 0x426   :  { %v1726_v45 = vsub.f32 %v1694_v28, %v1710_v24  ;;  %v1868_v15 = vmul.f32 %v2228_v5, %v1867_v19  ;;  %v1743_v40 = vmax.f32 %v1727_v20, 0.0  ;;  %v1955_v23 = vmul.f32 %v1885_v44, %v1763_v6  ;;  %vm1874_vm7 = vmor %vm1872_vm3, %vm1873_vm4 }
 0x427   :  { %v1859_v22 = vmul.f32 0.5, %v1858_v34  ;;  %v1762_v28 = vsub.f32 %v3031_v42, %v3202_v41  ;;  %v1990_v41 = vadd.f32 %v3262_v10, %v1973_v21  ;;  %vm1852_vm1 = vweird.f32 %v3327_v8 }
 0x428   :  { %v1742_v39 = vmax.f32 %v1726_v45, 0.0  ;;  %v1869_v46 = vmul.f32 0.5, %v1868_v15  ;;  %2129 = vmatpush.xpose.msk.msra.mxu3 %vm993_vm5, %v1992_v16  ;;  %v3360_v53 = vadd.f32 1e-05, %v1743_v40  ;;  %v1631_v25 = vpop.xlane.xlu2 %1630  ;;  %v1972_v49 = vmul.f32 %v3186_v3, %v1955_v23 }
 0x429   :  { %v1860_v17 = vsub.f32 1.5, %v1859_v22  ;;  %v1637_v36 = vpop.xlane.xlu1 %1636  ;;  %v1573_v9 = vpop.xlane.xlu0 %1572  ;;  %v1691_v37 = vmul.f32 0.03125, %v1631_v25 }
 0x42a   :  { %v3352_v61 = vadd.f32 1e-05, %v1742_v39  ;;  %v3357_v26 = vmul.f32 0.03125, %v1573_v9  ;;  %v1870_v12 = vsub.f32 1.5, %v1869_v46  ;;  %v3362_v29 = vpop.eup %2229  ;;  %v1693_v54 = vmul.f32 0.03125, %v1637_v36 }
 0x42b   :  { %v1861_v60 = vmul.f32 %v3308_v52, %v1860_v17  ;;  %v1847_v2 = vmul.f32 %v3362_v29, %v3327_v8  ;;  %vm1853_vm0 = vweird.f32 %v3362_v29  ;;  %v1989_v22 = vadd.f32 %v3262_v10, %v1972_v49 }
 0x42c   :  { %2231 = vrsqrt.f32 %v3352_v61  ;;  %v1709_v62 = vmul.f32 %v3357_v26, %v3357_v26  ;;  %v1871_v33 = vmul.f32 %v2228_v5, %v1870_v12  ;;  %2130 = vmatpush.xpose.msk.msra.mxu3 %vm993_vm5, %v1991_v58  ;;  %vm3412_vm10 = vmor %vm1852_vm1, %vm1853_vm0  ;;  %v1760_v36 = vsub.f32 %v3067_v1, %v3273_v7 }
 0x42d   :  { %2233 = vrsqrt.f32 %v3360_v53  ;;  %v1848_v30 = vmul.f32 %v3362_v29, %v1847_v2  ;;  %v1865_v0 = vsel %vm3381_vm9, %v3308_v52, %v1861_v60  ;;  %vm1832_vm11 = vweird.f32 %v3352_v61 }
 0x42e   :  { %v1725_v57 = vsub.f32 %v1693_v54, %v1709_v62  ;;  %v1875_v32 = vsel %vm1874_vm7, %v2228_v5, %v1871_v33  ;;  %v1953_v20 = vmul.f32 %v1865_v0, %v1761_v38  ;;  %vm1842_vm15 = vweird.f32 %v3360_v53 }
 0x42f   :  { %v1954_v63 = vmul.f32 %v1875_v32, %v1762_v28  ;;  %v1849_v34 = vmul.f32 0.5, %v1848_v30  ;;  %v1759_v0 = vsub.f32 %v3057_v47, %v3303_v35 }
 0x430   :  { %v1741_v42 = vmax.f32 %v1725_v57, 0.0  ;;  %2131 = vmatpush.xpose.msk.msra.mxu3 %vm993_vm5, %v1990_v41  ;;  %v1970_v62 = vmul.f32 %v3186_v3, %v1953_v20  ;;  %v2245_v20 = vmov 0  }
 0x431   :  { %v1567_v5 = vpop.xlane.xlu1 %1566  ;;  %v1634_v19 = vpop.xlane.xlu0 %1633  ;;  %v1850_v43 = vsub.f32 1.5, %v1849_v34  ;;  %v1971_v6 = vmul.f32 %v3186_v3, %v1954_v63  ;;  %2145 = vset.pattern.permute.xlu2 %v2245_v20  ;;  %2146 = vset.pattern.permute.xlu0 %v2245_v20 }
 0x432   :  { %v3393_v50 = vpop.eup %2231  ;;  %v3395_v45 = vadd.f32 1e-05, %v1741_v42  ;;  %v3398_v56 = vmul.f32 0.03125, %v1567_v5  ;;  %v1692_v31 = vmul.f32 0.03125, %v1634_v19  ;;  %v1987_v42 = vadd.f32 %v3262_v10, %v1970_v62  ;;  %1998 = vperm.xlu2 %2145, %v2981_v11  }
 0x433   :  { %v1827_v52 = vmul.f32 %v3393_v50, %v3352_v61  ;;  %v2234_v15 = vpop.eup %2233  ;;  %v1851_v44 = vmul.f32 %v3362_v29, %v1850_v43  ;;  %v1988_v54 = vadd.f32 %v3262_v10, %v1971_v6  ;;  %vm1833_vm12 = vweird.f32 %v3393_v50 }
 0x434   :  { %2235 = vrsqrt.f32 %v3395_v45  ;;  %v1707_v16 = vmul.f32 %v3398_v56, %v3398_v56  ;;  %v1837_v14 = vmul.f32 %v2234_v15, %v3360_v53  ;;  %v1724_v40 = vsub.f32 %v1692_v31, %v1708_v48  ;;  %2132 = vmatpush.xpose.msk.msra.mxu3 %vm993_vm5, %v1989_v22  ;;  %vm3443_vm14 = vmor %vm1832_vm11, %vm1833_vm12 }
 0x435   :  { %v1828_v39 = vmul.f32 %v3393_v50, %v1827_v52  ;;  %v1855_v9 = vsel %vm3412_vm10, %v3362_v29, %v1851_v44  ;;  %vm1843_vm13 = vweird.f32 %v2234_v15  ;;  %v1758_v5 = vsub.f32 %v3063_v59, %v3319_v18 }
 0x436   :  { %v1723_v46 = vsub.f32 %v1691_v37, %v1707_v16  ;;  %v1838_v21 = vmul.f32 %v2234_v15, %v1837_v14  ;;  %v1740_v12 = vmax.f32 %v1724_v40, 0.0  ;;  %v1952_v2 = vmul.f32 %v1855_v9, %v1760_v36  ;;  %vm1844_vm2 = vmor %vm1842_vm15, %vm1843_vm13 }
 0x437   :  { %v1829_v8 = vmul.f32 0.5, %v1828_v39  ;;  %vm1822_vm4 = vweird.f32 %v3395_v45  ;;  %v1757_v18 = vsub.f32 %v3094_v4, %v3357_v26 }
 0x438   :  { %v1739_v23 = vmax.f32 %v1723_v46, 0.0  ;;  %v1839_v60 = vmul.f32 0.5, %v1838_v21  ;;  %v3428_v29 = vadd.f32 1e-05, %v1740_v12  ;;  %2133 = vmatpush.xpose.msk.msra.mxu3 %vm993_vm5, %v1988_v54  ;;  %v1969_v61 = vmul.f32 %v3186_v3, %v1952_v2 }
 0x439   :  { %v1830_v58 = vsub.f32 1.5, %v1829_v8  ;;  %v1628_v33 = vpop.xlane.xlu1 %1627  ;;  %v1564_v1 = vpop.xlane.xlu0 %1563 }
 0x43a   :  { %v2236_v7 = vpop.eup %2235  ;;  %v3426_v28 = vadd.f32 1e-05, %v1739_v23  ;;  %v3431_v57 = vmul.f32 0.03125, %v1564_v1  ;;  %v1840_v25 = vsub.f32 1.5, %v1839_v60  ;;  %v1690_v32 = vmul.f32 0.03125, %v1628_v33 }
 0x43b   :  { %v1831_v30 = vmul.f32 %v3393_v50, %v1830_v58  ;;  %v1817_v49 = vmul.f32 %v2236_v7, %v3395_v45  ;;  %v1986_v31 = vadd.f32 %v3262_v10, %v1969_v61  ;;  %vm1823_vm3 = vweird.f32 %v2236_v7 }
 0x43c   :  { %2237 = vrsqrt.f32 %v3426_v28  ;;  %v1706_v24 = vmul.f32 %v3431_v57, %v3431_v57  ;;  %v1841_v63 = vmul.f32 %v2234_v15, %v1840_v25  ;;  %2134 = vmatpush.xpose.msk.msra.mxu3 %vm993_vm5, %v1987_v42  ;;  %vm1824_vm6 = vmor %vm1822_vm4, %vm1823_vm3  ;;  %vm1802_vm9 = vweird.f32 %v3426_v28 }
 0x43d   :  { %v1818_v38 = vmul.f32 %v2236_v7, %v1817_v49  ;;  %2239 = vrsqrt.f32 %v3428_v29  ;;  %v1835_v34 = vsel %vm3443_vm14, %v3393_v50, %v1831_v30  ;;  %vm1812_vm1 = vweird.f32 %v3428_v29 }
 0x43e   :  { %v1722_v48 = vsub.f32 %v1690_v32, %v1706_v24  ;;  %v1845_v19 = vsel %vm1844_vm2, %v2234_v15, %v1841_v63  ;;  %v1950_v47 = vmul.f32 %v1835_v34, %v1758_v5  ;;  %v1756_v58 = vsub.f32 %v3084_v55, %v3354_v51 }
 0x43f   :  { %v1819_v53 = vmul.f32 0.5, %v1818_v38  ;;  %v1951_v43 = vmul.f32 %v1845_v19, %v1759_v0  ;;  %v1755_v60 = vsub.f32 %v3090_v13, %v3398_v56  ;;  %v1754_v13 = vsub.f32 %v3111_v27, %v3431_v57 }
 0x440   :  { %v1738_v37 = vmax.f32 %v1722_v48, 0.0  ;;  %2135 = vmatpush.xpose.msk.msra.mxu3 %vm993_vm5, %v1986_v31  ;;  %v1967_v17 = vmul.f32 %v3186_v3, %v1950_v47  ;;  %v2000_v63 = vrot.slane %v2981_v11, 6 }
 0x441   :  { %v1820_v35 = vsub.f32 1.5, %v1819_v53  ;;  %v1968_v22 = vmul.f32 %v3186_v3, %v1951_v43 }
 0x442   :  { %v2238_v52 = vpop.eup %2237  ;;  %v1770_v50 = vadd.f32 1e-05, %v1738_v37  ;;  %v1984_v4 = vadd.f32 %v3262_v10, %v1967_v17 }
 0x443   :  { %v2240_v16 = vpop.eup %2239  ;;  %v1821_v6 = vmul.f32 %v2236_v7, %v1820_v35  ;;  %v1797_v59 = vmul.f32 %v2238_v52, %v3426_v28  ;;  %v1985_v14 = vadd.f32 %v3262_v10, %v1968_v22  ;;  %vm1803_vm7 = vweird.f32 %v2238_v52 }
 0x444   :  { %v1807_v15 = vmul.f32 %v2240_v16, %v3428_v29  ;;  %2241 = vrsqrt.f32 %v1770_v50  ;;  %vm1813_vm8 = vweird.f32 %v2240_v16  ;;  %vm1804_vm0 = vmor %vm1802_vm9, %vm1803_vm7  ;;  %vm1792_vm12 = vweird.f32 %v1770_v50 }
 0x445   :  { %v1825_v44 = vsel %vm1824_vm6, %v2236_v7, %v1821_v6  ;;  %v1798_v39 = vmul.f32 %v2238_v52, %v1797_v59  ;;  %2136 = vmatpush.xpose.msk.msra.mxu3 %vm993_vm5, %v1985_v14  ;;  %vm1814_vm10 = vmor %vm1812_vm1, %vm1813_vm8 }
 0x446   :  { %v1949_v46 = vmul.f32 %v1825_v44, %v1757_v18  ;;  %v1808_v45 = vmul.f32 %v2240_v16, %v1807_v15 }
 0x447   :  { %v1799_v40 = vmul.f32 0.5, %v1798_v39 }
 0x448   :  { %v1809_v36 = vmul.f32 0.5, %v1808_v45  ;;  %v1966_v9 = vmul.f32 %v3186_v3, %v1949_v46 }
 0x449   :  { %v1800_v8 = vsub.f32 1.5, %v1799_v40  ;;  %2137 = vmatpush.xpose.msk.msra.mxu3 %vm993_vm5, %v1984_v4 }
 0x44a   :  { %v2242_v26 = vpop.eup %2241  ;;  %v1810_v21 = vsub.f32 1.5, %v1809_v36  ;;  %v1983_v54 = vadd.f32 %v3262_v10, %v1966_v9 }
 0x44b   :  { %v1801_v23 = vmul.f32 %v2238_v52, %v1800_v8  ;;  %v1787_v12 = vmul.f32 %v2242_v26, %v1770_v50  ;;  %vm1793_vm11 = vweird.f32 %v2242_v26 }
 0x44c   :  { %v1811_v62 = vmul.f32 %v2240_v16, %v1810_v21  ;;  %vm1794_vm13 = vmor %vm1792_vm12, %vm1793_vm11 }
 0x44d   :  { %v1805_v33 = vsel %vm1804_vm0, %v2238_v52, %v1801_v23  ;;  %v1788_v1 = vmul.f32 %v2242_v26, %v1787_v12  ;;  %2138 = vmatpush.xpose.msk.msra.mxu3 %vm993_vm5, %v1983_v54 }
 0x44e   :  { %v1815_v7 = vsel %vm1814_vm10, %v2240_v16, %v1811_v62  ;;  %v1947_v2 = vmul.f32 %v1805_v33, %v1755_v60 }
 0x44f   :  { %v1789_v28 = vmul.f32 0.5, %v1788_v1  ;;  %v1948_v30 = vmul.f32 %v1815_v7, %v1756_v58 }
 0x450   :  { %v1964_v51 = vmul.f32 %v3186_v3, %v1947_v2 }
 0x451   :  { %v1790_v25 = vsub.f32 1.5, %v1789_v28  ;;  %v1965_v49 = vmul.f32 %v3186_v3, %v1948_v30 }
 0x452   :  { %v1981_v24 = vadd.f32 %v3262_v10, %v1964_v51 }
 0x453   :  { %v1791_v29 = vmul.f32 %v2242_v26, %v1790_v25  ;;  %v1982_v55 = vadd.f32 %v3262_v10, %v1965_v49 }
 0x455   :  { %v1795_v56 = vsel %vm1794_vm13, %v2242_v26, %v1791_v29  ;;  %2139 = vmatpush.xpose.msk.msra.mxu3 %vm993_vm5, %v1982_v55 }
 0x456   :  { %v1946_v32 = vmul.f32 %v1795_v56, %v1754_v13 }
 0x458   :  { %v1963_v42 = vmul.f32 %v3186_v3, %v1946_v32 }
 0x459   :  { %2140 = vmatpush.xpose.msk.msra.mxu3 %vm993_vm5, %v1981_v24 }
 0x45a   :  { %v1980_v41 = vadd.f32 %v3262_v10, %v1963_v42 }
 0x45d   :  { %2141 = vmatpush.xpose.msk.msra.mxu3 %vm993_vm5, %v1980_v41 }
 0x460   :  { %2142 = vmatmul.msk.f32.vlgmr.msra.gmra.mxu3 %vm993_vm5, %v2000_v63 }
 0x48c   :  { %v1999_v27 = vpop.permute.xlu2 %1998 }
 0x48d   :  { %v2001_v57 = vrot.slane %v1999_v27, 7 }
 0x4e3   :  { %v2070_v38 = vpop.f32.mrf.mxu3 }
 0x4e4   :  { %v2071_v0 = vadd.f32 %v2070_v38, %v2001_v57 }
 0x4e6   :  { %2073 = vst [vmem:[%s3505_s8] sm:$0x1] %v2071_v0 }

</bundles_post_ra>
